<compile_context>
chip_gen: v6e
topology: v6e:2x2x1
jax: 0.10.0
libtpu: 0.0.40
codegen_flags: <defaults>
</compile_context>

<pallas_src>
import jax
import jax.numpy as jnp
from jax.experimental import pallas as pl
from jax.experimental.pallas import tpu as pltpu


def _round_up(x, m):
    return ((x + m - 1) // m) * m


def _pad2(a, rows, cols):
    """Zero-pad a 2D array up to (rows, cols)."""
    return jnp.pad(a, ((0, rows - a.shape[0]), (0, cols - a.shape[1])))


def _tensorcores_per_chip():
    """Best-effort TC count; conservative default 1 (never over-split)."""
    try:
        info = pltpu.get_tpu_info()
        for name in ("num_cores", "core_count", "num_tensorcores",
                     "tensorcores_per_chip", "cores_per_chip"):
            v = getattr(info, name, None)
            if isinstance(v, int) and v >= 1:
                return v
    except Exception:
        pass
    return 1


def make_rnn_kernel(num_layers, T, Bb, H):
    """Kernel body for static num_layers / timesteps / padded batch-block / padded H."""

    def kernel(*refs):
        x_ref = refs[0]                                   # (1, T*Bb, input_size)
        idx = 1
        layers = []
        for _ in range(num_layers):
            # w_ih_t (in_pad, H), w_hh_t (H, H), bias (1, H)   [all pre-padded]
            layers.append(refs[idx:idx + 3])
            idx += 3
        fc_wt_ref, fc_b_ref, out_ref, proj_ref = refs[idx:idx + 4]
        # proj_ref: (T*Bb, H) VMEM scratch holding the CURRENT layer's input
        # projection (row t*Bb + b); rows are overwritten in-place with the
        # next layer's projection as soon as they have been consumed.

        # Layer-0 projection for all timesteps: one bulk MXU matmul with the
        # folded bias, written straight to VMEM (off the serial h-chain).
        w_ih0_ref, _, b0_ref = layers[0]
        proj_ref[...] = (
            jnp.dot(x_ref[0], w_ih0_ref[...], preferred_element_type=jnp.float32)
            + b0_ref[...])

        h = jnp.zeros((Bb, H), jnp.float32)
        for l in range(num_layers):
            w_hh_t = layers[l][1][...]                    # (H, H), pre-transposed
            last = l == num_layers - 1
            if not last:
                w_ih_next = layers[l + 1][0][...]         # (H, H)
                b_next = layers[l + 1][2][...]            # (1, H)

            h = jnp.zeros((Bb, H), jnp.float32)           # h0 = 0 per layer

            # Fully unrolled time loop: only h is live across steps; proj is
            # loaded/stored per step with static, sublane/lane-aligned slices.
            for t in range(T):
                r = t * Bb
                p_t = proj_ref[r:r + Bb, :]
                h = jnp.tanh(p_t + jnp.dot(h, w_hh_t,
                                           preferred_element_type=jnp.float32))
                if not last:
                    # Next layer's input projection for timestep t, issued
                    # under the recurrence's MXU/EUP latency stalls.
                    # Safe in-place overwrite: these rows were read above and
                    # the next layer reads them in the same t order.
                    proj_ref[r:r + Bb, :] = (
                        jnp.dot(h, w_ih_next, preferred_element_type=jnp.float32)
                        + b_next)

        # fc head on the last timestep of the last layer (lane-dense O_pad).
        out_ref[0] = (jnp.dot(h, fc_wt_ref[...],
                              preferred_element_type=jnp.float32)
                      + fc_b_ref[...])

    return kernel


def rnn_pallas(x, layer_params, fc_w, fc_b, batch_blocks=None):
    """x: (B, T, input_size) float32, batch_first like PyTorch."""
    B, T, I = x.shape
    O, H = fc_w.shape
    L = len(layer_params)

    H_pad = _round_up(H, 128)                 # lane-dense hidden
    O_pad = _round_up(O, 128)                 # lane-dense fc output

    if batch_blocks is None:
        # Only split the batch when the chip has >1 TensorCore (v7x) and each
        # block still fills >= 8 sublanes of real rows. On 1-TC chips the grid
        # is a sequential loop, so splitting would double the recurrence time.
        ntc = _tensorcores_per_chip()
        batch_blocks = ntc if (ntc > 1 and B >= 8 * ntc) else 1
    G = max(1, int(batch_blocks))
    B_pad = _round_up(B, 8 * G)               # sublane-aligned per block
    Bb = B_pad // G

    # Wrapper-side layout work (free-ish in XLA): time-major, zero-padded
    # batch, blocked so the kernel sees one 2D (T*Bb, I) slab per grid step.
    x_tm = jnp.transpose(x, (1, 0, 2))                        # (T, B, I)
    x_tm = jnp.pad(x_tm, ((0, 0), (0, B_pad - B), (0, 0)))    # (T, B_pad, I)
    x_blk = (x_tm.reshape(T, G, Bb, I)
                 .transpose(1, 0, 2, 3)
                 .reshape(G, T * Bb, I))

    buffered = getattr(pl, "Buffered", None)

    def invariant_spec(a):
        # Grid-invariant (weights/biases): constant index_map, single buffer.
        nd = a.ndim
        idx = lambda g, nd=nd: (0,) * nd
        if buffered is not None:
            try:
                return pl.BlockSpec(a.shape, idx, pipeline_mode=buffered(1))
            except TypeError:
                pass
        return pl.BlockSpec(a.shape, idx)

    in_arrays = [x_blk]
    in_specs = [pl.BlockSpec((1, T * Bb, I), lambda g: (g, 0, 0))]

    for l, (w_ih, w_hh, b_ih, b_hh) in enumerate(layer_params):
        in_dim = w_ih.shape[1]
        in_pad = in_dim if l == 0 else H_pad
        # Pre-transpose + zero-pad once in the wrapper (lane-dense along H).
        # Zero rows/cols guarantee the padded hidden columns stay exactly 0.
        w_ih_t = _pad2(w_ih.T, in_pad, H_pad)                 # (in_pad, H_pad)
        w_hh_t = _pad2(w_hh.T, H_pad, H_pad)                  # (H_pad, H_pad)
        bias = _pad2((b_ih + b_hh).reshape(1, -1), 1, H_pad)  # folded biases
        for a in (w_ih_t, w_hh_t, bias):
            in_arrays.append(a)
            in_specs.append(invariant_spec(a))

    fc_wt = _pad2(fc_w.T, H_pad, O_pad)                       # (H_pad, O_pad)
    fc_bp = _pad2(fc_b.reshape(1, -1), 1, O_pad)              # (1, O_pad)
    for a in (fc_wt, fc_bp):
        in_arrays.append(a)
        in_specs.append(invariant_spec(a))

    # Explicit VMEM budget (keeps headroom on v7x's 64 MiB physical VMEM).
    def _nbytes(a):
        return int(a.size) * a.dtype.itemsize
    block_bytes = 4 * T * Bb * I                      # x block
    weight_bytes = sum(_nbytes(a) for a in in_arrays[1:])
    scratch_bytes = 4 * T * Bb * H_pad                # proj scratch
    out_bytes = 4 * Bb * O_pad
    vmem_limit = (2 * (block_bytes + out_bytes) + 2 * weight_bytes
                  + scratch_bytes + (2 << 20))
    vmem_limit = int(min(max(vmem_limit, 4 << 20), 32 << 20))

    kernel = make_rnn_kernel(L, T, Bb, H_pad)
    out = pl.pallas_call(
        kernel,
        out_shape=jax.ShapeDtypeStruct((G, Bb, O_pad), jnp.float32),
        grid=(G,),
        in_specs=in_specs,
        out_specs=pl.BlockSpec((1, Bb, O_pad), lambda g: (g, 0, 0)),
        scratch_shapes=[
            pltpu.VMEM((T * Bb, H_pad), jnp.float32),   # projection buffer
        ],
        compiler_params=pltpu.CompilerParams(
            dimension_semantics=("parallel",),
            vmem_limit_bytes=vmem_limit),
    )(*in_arrays)

    # Drop padded batch rows and padded output lanes.
    return out.reshape(B_pad, O_pad)[:B, :O]


def rnn_reference(x, layer_params, fc_w, fc_b):
    """Pure-JAX reference matching torch.nn.RNN(batch_first=True) + Linear."""
    B, T, _ = x.shape
    H = fc_w.shape[1]
    seq = x
    for (w_ih, w_hh, b_ih, b_hh) in layer_params:
        h = jnp.zeros((B, H), jnp.float32)
        outs = []
        for t in range(T):
            h = jnp.tanh(seq[:, t, :] @ w_ih.T + b_ih + h @ w_hh.T + b_hh)
            outs.append(h)
        seq = jnp.stack(outs, axis=1)
    return seq[:, -1, :] @ fc_w.T + fc_b


if __name__ == "__main__":
    # Small shapes consistent with the module's forward.
    B, T = 2, 8
    input_size, hidden_size, num_layers, output_size = 16, 32, 2, 10

    key = jax.random.PRNGKey(0)
    k = 1.0 / jnp.sqrt(hidden_size)

    def uni(key, shape):
        return jax.random.uniform(key, shape, jnp.float32, -k, k)

    keys = jax.random.split(key, 4 * num_layers + 3)
    ki = iter(range(len(keys)))

    layer_params = []
    for l in range(num_layers):
        in_dim = input_size if l == 0 else hidden_size
        w_ih = uni(keys[next(ki)], (hidden_size, in_dim))
        w_hh = uni(keys[next(ki)], (hidden_size, hidden_size))
        b_ih = uni(keys[next(ki)], (hidden_size,))
        b_hh = uni(keys[next(ki)], (hidden_size,))
        layer_params.append((w_ih, w_hh, b_ih, b_hh))

    fc_w = uni(keys[next(ki)], (output_size, hidden_size))
    fc_b = uni(keys[next(ki)], (output_size,))
    x = jax.random.normal(keys[next(ki)], (B, T, input_size), jnp.float32)

    out = rnn_pallas(x, layer_params, fc_w, fc_b)
    out = jax.block_until_ready(out)

    ref = rnn_reference(x, layer_params, fc_w, fc_b)
    assert out.shape == (B, output_size)
    assert jnp.allclose(out, ref, rtol=1e-4, atol=1e-4), (out, ref)

    print("KERNEL_OK")
</pallas_src>

<mosaic_0001>
module attributes {stable_mosaic.version = 11 : i64} {
  func.func @kernel(%arg0: i32, %arg1: memref<1x64x16xf32, #tpu.memory_space<vmem>>, %arg2: memref<16x128xf32, #tpu.memory_space<vmem>>, %arg3: memref<128x128xf32, #tpu.memory_space<vmem>>, %arg4: memref<1x128xf32, #tpu.memory_space<vmem>>, %arg5: memref<128x128xf32, #tpu.memory_space<vmem>>, %arg6: memref<128x128xf32, #tpu.memory_space<vmem>>, %arg7: memref<1x128xf32, #tpu.memory_space<vmem>>, %arg8: memref<128x128xf32, #tpu.memory_space<vmem>>, %arg9: memref<1x128xf32, #tpu.memory_space<vmem>>, %arg10: memref<1x8x128xf32, #tpu.memory_space<vmem>>, %arg11: memref<64x128xf32, #tpu.memory_space<vmem>>) attributes {dimension_semantics = [#tpu.dimension_semantics<parallel>], iteration_bounds = array<i64: 1>, scalar_prefetch = 0 : i64, scratch_operands = 1 : i64, tpu.core_type = #tpu.core_type<tc>, window_params = [{transform_indices = @transform_0, window_bounds = array<i64: 1, 64, 16>}, {pipeline_mode = #tpu.pipeline_mode<synchronous>, transform_indices = @transform_1, window_bounds = array<i64: 16, 128>}, {pipeline_mode = #tpu.pipeline_mode<synchronous>, transform_indices = @transform_2, window_bounds = array<i64: 128, 128>}, {pipeline_mode = #tpu.pipeline_mode<synchronous>, transform_indices = @transform_3, window_bounds = array<i64: 1, 128>}, {pipeline_mode = #tpu.pipeline_mode<synchronous>, transform_indices = @transform_4, window_bounds = array<i64: 128, 128>}, {pipeline_mode = #tpu.pipeline_mode<synchronous>, transform_indices = @transform_5, window_bounds = array<i64: 128, 128>}, {pipeline_mode = #tpu.pipeline_mode<synchronous>, transform_indices = @transform_6, window_bounds = array<i64: 1, 128>}, {pipeline_mode = #tpu.pipeline_mode<synchronous>, transform_indices = @transform_7, window_bounds = array<i64: 128, 128>}, {pipeline_mode = #tpu.pipeline_mode<synchronous>, transform_indices = @transform_8, window_bounds = array<i64: 1, 128>}, {transform_indices = @transform_9, window_bounds = array<i64: 1, 8, 128>}]} {
    %c0 = arith.constant 0 : index
    %c0_0 = arith.constant 0 : index
    %c0_1 = arith.constant 0 : index
    %0 = vector.load %arg1[%c0, %c0_0, %c0_1] : memref<1x64x16xf32, #tpu.memory_space<vmem>>, vector<1x64x16xf32>
    %1 = vector.shape_cast %0 : vector<1x64x16xf32> to vector<64x16xf32>
    %c0_2 = arith.constant 0 : index
    %c0_3 = arith.constant 0 : index
    %2 = vector.load %arg2[%c0_2, %c0_3] : memref<16x128xf32, #tpu.memory_space<vmem>>, vector<16x128xf32>
    %cst = arith.constant dense<0.000000e+00> : vector<64x128xf32>
    %3 = tpu.matmul %1, %2, %cst {dimension_numbers = #tpu.dot_dimension_numbers<[1], [0], [0], [1], [0, 0, 1, 1], [], []>} : vector<64x16xf32>, vector<16x128xf32>, vector<64x128xf32> -> vector<64x128xf32>
    %c0_4 = arith.constant 0 : index
    %c0_5 = arith.constant 0 : index
    %4 = vector.load %arg4[%c0_4, %c0_5] : memref<1x128xf32, #tpu.memory_space<vmem>>, vector<1x128xf32>
    %5 = vector.broadcast %4 : vector<1x128xf32> to vector<64x128xf32>
    %6 = arith.addf %3, %5 : vector<64x128xf32>
    %c0_6 = arith.constant 0 : index
    %c0_7 = arith.constant 0 : index
    %7 = vector.load %arg11[%c0_6, %c0_7] : memref<64x128xf32, #tpu.memory_space<vmem>>, vector<64x128xf32>
    tpu.vector_store %arg11[%c0_6, %c0_7], %6 {strides = array<i32>} : memref<64x128xf32, #tpu.memory_space<vmem>>, vector<64x128xf32>,
    %c0_8 = arith.constant 0 : index
    %c0_9 = arith.constant 0 : index
    %8 = vector.load %arg3[%c0_8, %c0_9] : memref<128x128xf32, #tpu.memory_space<vmem>>, vector<128x128xf32>
    %c0_10 = arith.constant 0 : index
    %c0_11 = arith.constant 0 : index
    %9 = vector.load %arg5[%c0_10, %c0_11] : memref<128x128xf32, #tpu.memory_space<vmem>>, vector<128x128xf32>
    %c0_12 = arith.constant 0 : index
    %c0_13 = arith.constant 0 : index
    %10 = vector.load %arg7[%c0_12, %c0_13] : memref<1x128xf32, #tpu.memory_space<vmem>>, vector<1x128xf32>
    %cst_14 = arith.constant 0.000000e+00 : f32
    %11 = vector.broadcast %cst_14 : f32 to vector<8x128xf32>
    %c0_15 = arith.constant 0 : index
    %c0_16 = arith.constant 0 : index
    %12 = vector.load %arg11[%c0_15, %c0_16] : memref<64x128xf32, #tpu.memory_space<vmem>>, vector<8x128xf32>
    %cst_17 = arith.constant dense<0.000000e+00> : vector<8x128xf32>
    %13 = tpu.matmul %11, %8, %cst_17 {dimension_numbers = #tpu.dot_dimension_numbers<[1], [0], [0], [1], [0, 0, 1, 1], [], []>} : vector<8x128xf32>, vector<128x128xf32>, vector<8x128xf32> -> vector<8x128xf32>
    %14 = arith.addf %12, %13 : vector<8x128xf32>
    %15 = math.tanh %14 : vector<8x128xf32>
    %cst_18 = arith.constant dense<0.000000e+00> : vector<8x128xf32>
    %16 = tpu.matmul %15, %9, %cst_18 {dimension_numbers = #tpu.dot_dimension_numbers<[1], [0], [0], [1], [0, 0, 1, 1], [], []>} : vector<8x128xf32>, vector<128x128xf32>, vector<8x128xf32> -> vector<8x128xf32>
    %17 = vector.broadcast %10 : vector<1x128xf32> to vector<8x128xf32>
    %18 = arith.addf %16, %17 : vector<8x128xf32>
    %c0_19 = arith.constant 0 : index
    %c0_20 = arith.constant 0 : index
    %19 = vector.load %arg11[%c0_19, %c0_20] : memref<64x128xf32, #tpu.memory_space<vmem>>, vector<8x128xf32>
    tpu.vector_store %arg11[%c0_19, %c0_20], %18 {strides = array<i32>} : memref<64x128xf32, #tpu.memory_space<vmem>>, vector<8x128xf32>,
    %c8 = arith.constant 8 : index
    %c0_21 = arith.constant 0 : index
    %20 = vector.load %arg11[%c8, %c0_21] : memref<64x128xf32, #tpu.memory_space<vmem>>, vector<8x128xf32>
    %cst_22 = arith.constant dense<0.000000e+00> : vector<8x128xf32>
    %21 = tpu.matmul %15, %8, %cst_22 {dimension_numbers = #tpu.dot_dimension_numbers<[1], [0], [0], [1], [0, 0, 1, 1], [], []>} : vector<8x128xf32>, vector<128x128xf32>, vector<8x128xf32> -> vector<8x128xf32>
    %22 = arith.addf %20, %21 : vector<8x128xf32>
    %23 = math.tanh %22 : vector<8x128xf32>
    %cst_23 = arith.constant dense<0.000000e+00> : vector<8x128xf32>
    %24 = tpu.matmul %23, %9, %cst_23 {dimension_numbers = #tpu.dot_dimension_numbers<[1], [0], [0], [1], [0, 0, 1, 1], [], []>} : vector<8x128xf32>, vector<128x128xf32>, vector<8x128xf32> -> vector<8x128xf32>
    %25 = vector.broadcast %10 : vector<1x128xf32> to vector<8x128xf32>
    %26 = arith.addf %24, %25 : vector<8x128xf32>
    %c8_24 = arith.constant 8 : index
    %c0_25 = arith.constant 0 : index
    %27 = vector.load %arg11[%c8_24, %c0_25] : memref<64x128xf32, #tpu.memory_space<vmem>>, vector<8x128xf32>
    tpu.vector_store %arg11[%c8_24, %c0_25], %26 {strides = array<i32>} : memref<64x128xf32, #tpu.memory_space<vmem>>, vector<8x128xf32>,
    %c16 = arith.constant 16 : index
    %c0_26 = arith.constant 0 : index
    %28 = vector.load %arg11[%c16, %c0_26] : memref<64x128xf32, #tpu.memory_space<vmem>>, vector<8x128xf32>
    %cst_27 = arith.constant dense<0.000000e+00> : vector<8x128xf32>
    %29 = tpu.matmul %23, %8, %cst_27 {dimension_numbers = #tpu.dot_dimension_numbers<[1], [0], [0], [1], [0, 0, 1, 1], [], []>} : vector<8x128xf32>, vector<128x128xf32>, vector<8x128xf32> -> vector<8x128xf32>
    %30 = arith.addf %28, %29 : vector<8x128xf32>
    %31 = math.tanh %30 : vector<8x128xf32>
    %cst_28 = arith.constant dense<0.000000e+00> : vector<8x128xf32>
    %32 = tpu.matmul %31, %9, %cst_28 {dimension_numbers = #tpu.dot_dimension_numbers<[1], [0], [0], [1], [0, 0, 1, 1], [], []>} : vector<8x128xf32>, vector<128x128xf32>, vector<8x128xf32> -> vector<8x128xf32>
    %33 = vector.broadcast %10 : vector<1x128xf32> to vector<8x128xf32>
    %34 = arith.addf %32, %33 : vector<8x128xf32>
    %c16_29 = arith.constant 16 : index
    %c0_30 = arith.constant 0 : index
    %35 = vector.load %arg11[%c16_29, %c0_30] : memref<64x128xf32, #tpu.memory_space<vmem>>, vector<8x128xf32>
    tpu.vector_store %arg11[%c16_29, %c0_30], %34 {strides = array<i32>} : memref<64x128xf32, #tpu.memory_space<vmem>>, vector<8x128xf32>,
    %c24 = arith.constant 24 : index
    %c0_31 = arith.constant 0 : index
    %36 = vector.load %arg11[%c24, %c0_31] : memref<64x128xf32, #tpu.memory_space<vmem>>, vector<8x128xf32>
    %cst_32 = arith.constant dense<0.000000e+00> : vector<8x128xf32>
    %37 = tpu.matmul %31, %8, %cst_32 {dimension_numbers = #tpu.dot_dimension_numbers<[1], [0], [0], [1], [0, 0, 1, 1], [], []>} : vector<8x128xf32>, vector<128x128xf32>, vector<8x128xf32> -> vector<8x128xf32>
    %38 = arith.addf %36, %37 : vector<8x128xf32>
    %39 = math.tanh %38 : vector<8x128xf32>
    %cst_33 = arith.constant dense<0.000000e+00> : vector<8x128xf32>
    %40 = tpu.matmul %39, %9, %cst_33 {dimension_numbers = #tpu.dot_dimension_numbers<[1], [0], [0], [1], [0, 0, 1, 1], [], []>} : vector<8x128xf32>, vector<128x128xf32>, vector<8x128xf32> -> vector<8x128xf32>
    %41 = vector.broadcast %10 : vector<1x128xf32> to vector<8x128xf32>
    %42 = arith.addf %40, %41 : vector<8x128xf32>
    %c24_34 = arith.constant 24 : index
    %c0_35 = arith.constant 0 : index
    %43 = vector.load %arg11[%c24_34, %c0_35] : memref<64x128xf32, #tpu.memory_space<vmem>>, vector<8x128xf32>
    tpu.vector_store %arg11[%c24_34, %c0_35], %42 {strides = array<i32>} : memref<64x128xf32, #tpu.memory_space<vmem>>, vector<8x128xf32>,
    %c32 = arith.constant 32 : index
    %c0_36 = arith.constant 0 : index
    %44 = vector.load %arg11[%c32, %c0_36] : memref<64x128xf32, #tpu.memory_space<vmem>>, vector<8x128xf32>
    %cst_37 = arith.constant dense<0.000000e+00> : vector<8x128xf32>
    %45 = tpu.matmul %39, %8, %cst_37 {dimension_numbers = #tpu.dot_dimension_numbers<[1], [0], [0], [1], [0, 0, 1, 1], [], []>} : vector<8x128xf32>, vector<128x128xf32>, vector<8x128xf32> -> vector<8x128xf32>
    %46 = arith.addf %44, %45 : vector<8x128xf32>
    %47 = math.tanh %46 : vector<8x128xf32>
    %cst_38 = arith.constant dense<0.000000e+00> : vector<8x128xf32>
    %48 = tpu.matmul %47, %9, %cst_38 {dimension_numbers = #tpu.dot_dimension_numbers<[1], [0], [0], [1], [0, 0, 1, 1], [], []>} : vector<8x128xf32>, vector<128x128xf32>, vector<8x128xf32> -> vector<8x128xf32>
    %49 = vector.broadcast %10 : vector<1x128xf32> to vector<8x128xf32>
    %50 = arith.addf %48, %49 : vector<8x128xf32>
    %c32_39 = arith.constant 32 : index
    %c0_40 = arith.constant 0 : index
    %51 = vector.load %arg11[%c32_39, %c0_40] : memref<64x128xf32, #tpu.memory_space<vmem>>, vector<8x128xf32>
    tpu.vector_store %arg11[%c32_39, %c0_40], %50 {strides = array<i32>} : memref<64x128xf32, #tpu.memory_space<vmem>>, vector<8x128xf32>,
    %c40 = arith.constant 40 : index
    %c0_41 = arith.constant 0 : index
    %52 = vector.load %arg11[%c40, %c0_41] : memref<64x128xf32, #tpu.memory_space<vmem>>, vector<8x128xf32>
    %cst_42 = arith.constant dense<0.000000e+00> : vector<8x128xf32>
    %53 = tpu.matmul %47, %8, %cst_42 {dimension_numbers = #tpu.dot_dimension_numbers<[1], [0], [0], [1], [0, 0, 1, 1], [], []>} : vector<8x128xf32>, vector<128x128xf32>, vector<8x128xf32> -> vector<8x128xf32>
    %54 = arith.addf %52, %53 : vector<8x128xf32>
    %55 = math.tanh %54 : vector<8x128xf32>
    %cst_43 = arith.constant dense<0.000000e+00> : vector<8x128xf32>
    %56 = tpu.matmul %55, %9, %cst_43 {dimension_numbers = #tpu.dot_dimension_numbers<[1], [0], [0], [1], [0, 0, 1, 1], [], []>} : vector<8x128xf32>, vector<128x128xf32>, vector<8x128xf32> -> vector<8x128xf32>
    %57 = vector.broadcast %10 : vector<1x128xf32> to vector<8x128xf32>
    %58 = arith.addf %56, %57 : vector<8x128xf32>
    %c40_44 = arith.constant 40 : index
    %c0_45 = arith.constant 0 : index
    %59 = vector.load %arg11[%c40_44, %c0_45] : memref<64x128xf32, #tpu.memory_space<vmem>>, vector<8x128xf32>
    tpu.vector_store %arg11[%c40_44, %c0_45], %58 {strides = array<i32>} : memref<64x128xf32, #tpu.memory_space<vmem>>, vector<8x128xf32>,
    %c48 = arith.constant 48 : index
    %c0_46 = arith.constant 0 : index
    %60 = vector.load %arg11[%c48, %c0_46] : memref<64x128xf32, #tpu.memory_space<vmem>>, vector<8x128xf32>
    %cst_47 = arith.constant dense<0.000000e+00> : vector<8x128xf32>
    %61 = tpu.matmul %55, %8, %cst_47 {dimension_numbers = #tpu.dot_dimension_numbers<[1], [0], [0], [1], [0, 0, 1, 1], [], []>} : vector<8x128xf32>, vector<128x128xf32>, vector<8x128xf32> -> vector<8x128xf32>
    %62 = arith.addf %60, %61 : vector<8x128xf32>
    %63 = math.tanh %62 : vector<8x128xf32>
    %cst_48 = arith.constant dense<0.000000e+00> : vector<8x128xf32>
    %64 = tpu.matmul %63, %9, %cst_48 {dimension_numbers = #tpu.dot_dimension_numbers<[1], [0], [0], [1], [0, 0, 1, 1], [], []>} : vector<8x128xf32>, vector<128x128xf32>, vector<8x128xf32> -> vector<8x128xf32>
    %65 = vector.broadcast %10 : vector<1x128xf32> to vector<8x128xf32>
    %66 = arith.addf %64, %65 : vector<8x128xf32>
    %c48_49 = arith.constant 48 : index
    %c0_50 = arith.constant 0 : index
    %67 = vector.load %arg11[%c48_49, %c0_50] : memref<64x128xf32, #tpu.memory_space<vmem>>, vector<8x128xf32>
    tpu.vector_store %arg11[%c48_49, %c0_50], %66 {strides = array<i32>} : memref<64x128xf32, #tpu.memory_space<vmem>>, vector<8x128xf32>,
    %c56 = arith.constant 56 : index
    %c0_51 = arith.constant 0 : index
    %68 = vector.load %arg11[%c56, %c0_51] : memref<64x128xf32, #tpu.memory_space<vmem>>, vector<8x128xf32>
    %cst_52 = arith.constant dense<0.000000e+00> : vector<8x128xf32>
    %69 = tpu.matmul %63, %8, %cst_52 {dimension_numbers = #tpu.dot_dimension_numbers<[1], [0], [0], [1], [0, 0, 1, 1], [], []>} : vector<8x128xf32>, vector<128x128xf32>, vector<8x128xf32> -> vector<8x128xf32>
    %70 = arith.addf %68, %69 : vector<8x128xf32>
    %71 = math.tanh %70 : vector<8x128xf32>
    %cst_53 = arith.constant dense<0.000000e+00> : vector<8x128xf32>
    %72 = tpu.matmul %71, %9, %cst_53 {dimension_numbers = #tpu.dot_dimension_numbers<[1], [0], [0], [1], [0, 0, 1, 1], [], []>} : vector<8x128xf32>, vector<128x128xf32>, vector<8x128xf32> -> vector<8x128xf32>
    %73 = vector.broadcast %10 : vector<1x128xf32> to vector<8x128xf32>
    %74 = arith.addf %72, %73 : vector<8x128xf32>
    %c56_54 = arith.constant 56 : index
    %c0_55 = arith.constant 0 : index
    %75 = vector.load %arg11[%c56_54, %c0_55] : memref<64x128xf32, #tpu.memory_space<vmem>>, vector<8x128xf32>
    tpu.vector_store %arg11[%c56_54, %c0_55], %74 {strides = array<i32>} : memref<64x128xf32, #tpu.memory_space<vmem>>, vector<8x128xf32>,
    %c0_56 = arith.constant 0 : index
    %c0_57 = arith.constant 0 : index
    %76 = vector.load %arg6[%c0_56, %c0_57] : memref<128x128xf32, #tpu.memory_space<vmem>>, vector<128x128xf32>
    %cst_58 = arith.constant 0.000000e+00 : f32
    %77 = vector.broadcast %cst_58 : f32 to vector<8x128xf32>
    %c0_59 = arith.constant 0 : index
    %c0_60 = arith.constant 0 : index
    %78 = vector.load %arg11[%c0_59, %c0_60] : memref<64x128xf32, #tpu.memory_space<vmem>>, vector<8x128xf32>
    %cst_61 = arith.constant dense<0.000000e+00> : vector<8x128xf32>
    %79 = tpu.matmul %77, %76, %cst_61 {dimension_numbers = #tpu.dot_dimension_numbers<[1], [0], [0], [1], [0, 0, 1, 1], [], []>} : vector<8x128xf32>, vector<128x128xf32>, vector<8x128xf32> -> vector<8x128xf32>
    %80 = arith.addf %78, %79 : vector<8x128xf32>
    %81 = math.tanh %80 : vector<8x128xf32>
    %c8_62 = arith.constant 8 : index
    %c0_63 = arith.constant 0 : index
    %82 = vector.load %arg11[%c8_62, %c0_63] : memref<64x128xf32, #tpu.memory_space<vmem>>, vector<8x128xf32>
    %cst_64 = arith.constant dense<0.000000e+00> : vector<8x128xf32>
    %83 = tpu.matmul %81, %76, %cst_64 {dimension_numbers = #tpu.dot_dimension_numbers<[1], [0], [0], [1], [0, 0, 1, 1], [], []>} : vector<8x128xf32>, vector<128x128xf32>, vector<8x128xf32> -> vector<8x128xf32>
    %84 = arith.addf %82, %83 : vector<8x128xf32>
    %85 = math.tanh %84 : vector<8x128xf32>
    %c16_65 = arith.constant 16 : index
    %c0_66 = arith.constant 0 : index
    %86 = vector.load %arg11[%c16_65, %c0_66] : memref<64x128xf32, #tpu.memory_space<vmem>>, vector<8x128xf32>
    %cst_67 = arith.constant dense<0.000000e+00> : vector<8x128xf32>
    %87 = tpu.matmul %85, %76, %cst_67 {dimension_numbers = #tpu.dot_dimension_numbers<[1], [0], [0], [1], [0, 0, 1, 1], [], []>} : vector<8x128xf32>, vector<128x128xf32>, vector<8x128xf32> -> vector<8x128xf32>
    %88 = arith.addf %86, %87 : vector<8x128xf32>
    %89 = math.tanh %88 : vector<8x128xf32>
    %c24_68 = arith.constant 24 : index
    %c0_69 = arith.constant 0 : index
    %90 = vector.load %arg11[%c24_68, %c0_69] : memref<64x128xf32, #tpu.memory_space<vmem>>, vector<8x128xf32>
    %cst_70 = arith.constant dense<0.000000e+00> : vector<8x128xf32>
    %91 = tpu.matmul %89, %76, %cst_70 {dimension_numbers = #tpu.dot_dimension_numbers<[1], [0], [0], [1], [0, 0, 1, 1], [], []>} : vector<8x128xf32>, vector<128x128xf32>, vector<8x128xf32> -> vector<8x128xf32>
    %92 = arith.addf %90, %91 : vector<8x128xf32>
    %93 = math.tanh %92 : vector<8x128xf32>
    %c32_71 = arith.constant 32 : index
    %c0_72 = arith.constant 0 : index
    %94 = vector.load %arg11[%c32_71, %c0_72] : memref<64x128xf32, #tpu.memory_space<vmem>>, vector<8x128xf32>
    %cst_73 = arith.constant dense<0.000000e+00> : vector<8x128xf32>
    %95 = tpu.matmul %93, %76, %cst_73 {dimension_numbers = #tpu.dot_dimension_numbers<[1], [0], [0], [1], [0, 0, 1, 1], [], []>} : vector<8x128xf32>, vector<128x128xf32>, vector<8x128xf32> -> vector<8x128xf32>
    %96 = arith.addf %94, %95 : vector<8x128xf32>
    %97 = math.tanh %96 : vector<8x128xf32>
    %c40_74 = arith.constant 40 : index
    %c0_75 = arith.constant 0 : index
    %98 = vector.load %arg11[%c40_74, %c0_75] : memref<64x128xf32, #tpu.memory_space<vmem>>, vector<8x128xf32>
    %cst_76 = arith.constant dense<0.000000e+00> : vector<8x128xf32>
    %99 = tpu.matmul %97, %76, %cst_76 {dimension_numbers = #tpu.dot_dimension_numbers<[1], [0], [0], [1], [0, 0, 1, 1], [], []>} : vector<8x128xf32>, vector<128x128xf32>, vector<8x128xf32> -> vector<8x128xf32>
    %100 = arith.addf %98, %99 : vector<8x128xf32>
    %101 = math.tanh %100 : vector<8x128xf32>
    %c48_77 = arith.constant 48 : index
    %c0_78 = arith.constant 0 : index
    %102 = vector.load %arg11[%c48_77, %c0_78] : memref<64x128xf32, #tpu.memory_space<vmem>>, vector<8x128xf32>
    %cst_79 = arith.constant dense<0.000000e+00> : vector<8x128xf32>
    %103 = tpu.matmul %101, %76, %cst_79 {dimension_numbers = #tpu.dot_dimension_numbers<[1], [0], [0], [1], [0, 0, 1, 1], [], []>} : vector<8x128xf32>, vector<128x128xf32>, vector<8x128xf32> -> vector<8x128xf32>
    %104 = arith.addf %102, %103 : vector<8x128xf32>
    %105 = math.tanh %104 : vector<8x128xf32>
    %c56_80 = arith.constant 56 : index
    %c0_81 = arith.constant 0 : index
    %106 = vector.load %arg11[%c56_80, %c0_81] : memref<64x128xf32, #tpu.memory_space<vmem>>, vector<8x128xf32>
    %cst_82 = arith.constant dense<0.000000e+00> : vector<8x128xf32>
    %107 = tpu.matmul %105, %76, %cst_82 {dimension_numbers = #tpu.dot_dimension_numbers<[1], [0], [0], [1], [0, 0, 1, 1], [], []>} : vector<8x128xf32>, vector<128x128xf32>, vector<8x128xf32> -> vector<8x128xf32>
    %108 = arith.addf %106, %107 : vector<8x128xf32>
    %109 = math.tanh %108 : vector<8x128xf32>
    %c0_83 = arith.constant 0 : index
    %c0_84 = arith.constant 0 : index
    %110 = vector.load %arg8[%c0_83, %c0_84] : memref<128x128xf32, #tpu.memory_space<vmem>>, vector<128x128xf32>
    %cst_85 = arith.constant dense<0.000000e+00> : vector<8x128xf32>
    %111 = tpu.matmul %109, %110, %cst_85 {dimension_numbers = #tpu.dot_dimension_numbers<[1], [0], [0], [1], [0, 0, 1, 1], [], []>} : vector<8x128xf32>, vector<128x128xf32>, vector<8x128xf32> -> vector<8x128xf32>
    %c0_86 = arith.constant 0 : index
    %c0_87 = arith.constant 0 : index
    %112 = vector.load %arg9[%c0_86, %c0_87] : memref<1x128xf32, #tpu.memory_space<vmem>>, vector<1x128xf32>
    %113 = vector.broadcast %112 : vector<1x128xf32> to vector<8x128xf32>
    %114 = arith.addf %111, %113 : vector<8x128xf32>
    %c0_88 = arith.constant 0 : index
    %c0_89 = arith.constant 0 : index
    %c0_90 = arith.constant 0 : index
    %115 = vector.load %arg10[%c0_88, %c0_89, %c0_90] : memref<1x8x128xf32, #tpu.memory_space<vmem>>, vector<1x8x128xf32>
    %116 = vector.shape_cast %115 : vector<1x8x128xf32> to vector<8x128xf32>
    %117 = vector.shape_cast %114 : vector<8x128xf32> to vector<1x8x128xf32>
    tpu.vector_store %arg10[%c0_88, %c0_89, %c0_90], %117 {strides = array<i32>} : memref<1x8x128xf32, #tpu.memory_space<vmem>>, vector<1x8x128xf32>,
    return
  }
  func.func @transform_0(%arg0: i32) -> (i32, i32, i32) {
    %c0_i32 = arith.constant 0 : i32
    %c0_i32_0 = arith.constant 0 : i32
    %c0_i32_1 = arith.constant 0 : i32
    return %arg0, %c0_i32, %c0_i32_0 : i32, i32, i32
  }
  func.func @transform_1(%arg0: i32) -> (i32, i32) {
    %c0_i32 = arith.constant 0 : i32
    %c0_i32_0 = arith.constant 0 : i32
    %c0_i32_1 = arith.constant 0 : i32
    return %c0_i32, %c0_i32_0 : i32, i32
  }
  func.func @transform_2(%arg0: i32) -> (i32, i32) {
    %c0_i32 = arith.constant 0 : i32
    %c0_i32_0 = arith.constant 0 : i32
    %c0_i32_1 = arith.constant 0 : i32
    return %c0_i32, %c0_i32_0 : i32, i32
  }
  func.func @transform_3(%arg0: i32) -> (i32, i32) {
    %c0_i32 = arith.constant 0 : i32
    %c0_i32_0 = arith.constant 0 : i32
    %c0_i32_1 = arith.constant 0 : i32
    return %c0_i32, %c0_i32_0 : i32, i32
  }
  func.func @transform_4(%arg0: i32) -> (i32, i32) {
    %c0_i32 = arith.constant 0 : i32
    %c0_i32_0 = arith.constant 0 : i32
    %c0_i32_1 = arith.constant 0 : i32
    return %c0_i32, %c0_i32_0 : i32, i32
  }
  func.func @transform_5(%arg0: i32) -> (i32, i32) {
    %c0_i32 = arith.constant 0 : i32
    %c0_i32_0 = arith.constant 0 : i32
    %c0_i32_1 = arith.constant 0 : i32
    return %c0_i32, %c0_i32_0 : i32, i32
  }
  func.func @transform_6(%arg0: i32) -> (i32, i32) {
    %c0_i32 = arith.constant 0 : i32
    %c0_i32_0 = arith.constant 0 : i32
    %c0_i32_1 = arith.constant 0 : i32
    return %c0_i32, %c0_i32_0 : i32, i32
  }
  func.func @transform_7(%arg0: i32) -> (i32, i32) {
    %c0_i32 = arith.constant 0 : i32
    %c0_i32_0 = arith.constant 0 : i32
    %c0_i32_1 = arith.constant 0 : i32
    return %c0_i32, %c0_i32_0 : i32, i32
  }
  func.func @transform_8(%arg0: i32) -> (i32, i32) {
    %c0_i32 = arith.constant 0 : i32
    %c0_i32_0 = arith.constant 0 : i32
    %c0_i32_1 = arith.constant 0 : i32
    return %c0_i32, %c0_i32_0 : i32, i32
  }
  func.func @transform_9(%arg0: i32) -> (i32, i32, i32) {
    %c0_i32 = arith.constant 0 : i32
    %c0_i32_0 = arith.constant 0 : i32
    %c0_i32_1 = arith.constant 0 : i32
    return %arg0, %c0_i32, %c0_i32_0 : i32, i32, i32
  }
}

</mosaic_0001>

<bundles_post_ra>
// kernel: tpu_custom_call.1
= control target key start
LH: loop header
LB: loop body
LE: loop exit
PB: predicated region body
PF: predicated region fallthrough
CT: control target
= control target key end

     0   :  { %14 = vsyncpa [#allocation4], 0  ;;  %s4776_s0 = inlined_call_operand.vmem [shape: f32[1,64,16], index: 0, kind: input, shape index: {}]   ;;  %s4777_s1 = inlined_call_operand.vmem [shape: f32[16,128], index: 1, kind: input, shape index: {}]   ;;  %s4778_s2 = inlined_call_operand.hbm [shape: f32[128,128], index: 2, kind: input, shape index: {}]   ;;  %s4779_s3 = inlined_call_operand.vmem [shape: f32[1,128], index: 3, kind: input, shape index: {}]   ;;  %s4780_s4 = inlined_call_operand.hbm [shape: f32[128,128], index: 4, kind: input, shape index: {}]   ;;  %s4781_s5 = inlined_call_operand.hbm [shape: f32[128,128], index: 5, kind: input, shape index: {}]   ;;  %s4782_s6 = inlined_call_operand.vmem [shape: f32[1,128], index: 6, kind: input, shape index: {}]   ;;  %s4783_s7 = inlined_call_operand.hbm [shape: f32[128,128], index: 7, kind: input, shape index: {}]   ;;  %s4784_s8 = inlined_call_operand.vmem [shape: f32[1,128], index: 8, kind: input, shape index: {}]   ;;  %s4785_s9 = inlined_call_operand.hbm [shape: f32[1,8,128], index: 9, kind: output, shape index: {}]  }
   0x1   :  { %15 = vsyncpa [#allocation7], 0 }
   0x2   :  { %16 = vsyncpa [#allocation10], 0 }
   0x3   :  { %17 = vsyncpa [#allocation5], 0  ;;  %s3664_s30 = smov [#allocation6]   ;;  %s3665_s11 = smov [#allocation3]  }
   0x4   :  { %s41_s10 = sshll.u32 %s3664_s30, 4  ;;  %s27_s12 = sshll.u32 %s3665_s11, 4  ;;  %s42_s10 = int_to_ptr.vmem [resolvable:$true] %s41_s10  ;;  %s28_s12 = int_to_ptr.vmem [resolvable:$true] %s27_s12 }
   0x5   :  { %s3564_s13 = scalar_lea.vmem %s42_s10, 2048  ;;  %p3569_p1 = scmp.lt.s32.totalorder %s42_s10, %s42_s10 }
   0x6   :  { %p3565_p0 = scmp.ne.s32.totalorder %s42_s10, %s3564_s13  ;;  %p3570_p2 = scmp.lt.s32.totalorder %s3564_s13, %s3564_s13 }
   0x8   :  { %p3571_p3 = por %p3570_p2, %p3569_p1 }
   0xa   :  { %p3572_p4 = pnand %p3571_p3, %p3565_p0 }
   0xc   :  { %3575 = shalt.err (!%p3572_p4)
}
   0xd   :  { %s3666_s14 = smov 128   ;;  %s3667_s15 = smov 8  }
   0xe   :  { %47 = dma.hbm_to_vmem [thread:$0]  %s4780_s4, 2048, %s42_s10, [#allocation7], %s3666_s14, %s3666_s14, %s3667_s15  }
   0xf   :  { %s3584_s18 = scalar_lea.vmem %s28_s12, 2048  ;;  %p3589_p6 = scmp.lt.s32.totalorder %s28_s12, %s28_s12 }
  0x10   :  { %p3585_p5 = scmp.ne.s32.totalorder %s28_s12, %s3584_s18  ;;  %p3590_p7 = scmp.lt.s32.totalorder %s3584_s18, %s3584_s18 }
  0x12   :  { %p3591_p8 = por %p3590_p7, %p3589_p6 }
  0x14   :  { %p3592_p9 = pnand %p3591_p8, %p3585_p5 }
  0x16   :  { %3595 = shalt.err (!%p3592_p9)
}
  0x17   :  { %33 = dma.hbm_to_vmem [thread:$0]  %s4778_s2, 2048, %s28_s12, [#allocation4], %s3666_s14, %s3666_s14, %s3667_s15  }
  0x18   :  { %s3668_s21 = smov [#allocation8]   ;;  %s3669_s23 = smov [#allocation9]  }
  0x19   :  { %s53_s22 = sshll.u32 %s3668_s21, 4  ;;  %s67_s24 = sshll.u32 %s3669_s23, 4  ;;  %s54_s22 = int_to_ptr.vmem [resolvable:$true] %s53_s22  ;;  %s68_s24 = int_to_ptr.vmem [resolvable:$true] %s67_s24 }
  0x1a   :  { %s3604_s4 = scalar_lea.vmem %s54_s22, 2048  ;;  %p3609_p11 = scmp.lt.s32.totalorder %s54_s22, %s54_s22 }
  0x1b   :  { %p3605_p10 = scmp.ne.s32.totalorder %s54_s22, %s3604_s4  ;;  %p3610_p12 = scmp.lt.s32.totalorder %s3604_s4, %s3604_s4 }
  0x1d   :  { %p3611_p13 = por %p3610_p12, %p3609_p11 }
  0x1f   :  { %p3612_p0 = pnand %p3611_p13, %p3605_p10 }
  0x21   :  { %3615 = shalt.err (!%p3612_p0)
}
  0x22   :  { %59 = dma.hbm_to_vmem [thread:$0]  %s4781_s5, 2048, %s54_s22, [#allocation7], %s3666_s14, %s3666_s14, %s3667_s15  }
  0x23   :  { %s3624_s2 = scalar_lea.vmem %s68_s24, 2048  ;;  %p3629_p2 = scmp.lt.s32.totalorder %s68_s24, %s68_s24 }
  0x24   :  { %p3625_p1 = scmp.ne.s32.totalorder %s68_s24, %s3624_s2  ;;  %p3630_p3 = scmp.lt.s32.totalorder %s3624_s2, %s3624_s2 }
  0x26   :  { %p3631_p4 = por %p3630_p3, %p3629_p2 }
  0x28   :  { %p3632_p5 = pnand %p3631_p4, %p3625_p1 }
  0x2a   :  { %3635 = shalt.err (!%p3632_p5)
}
  0x2b   :  { %73 = dma.hbm_to_vmem [thread:$0]  %s4783_s7, 2048, %s68_s24, [#allocation10], %s3666_s14, %s3666_s14, %s3667_s15  }
  0x2c   :  { %3656 = dma.done.wait [#allocation4], 2048  }
  0x2d   :  { %3657 = vsyncadd [#allocation4], 4294965248 }
  0x2e   :  { %3658 = dma.done.wait [#allocation7], 4096  }
  0x2f   :  { %3659 = vsyncadd [#allocation7], 4294963200 }
  0x30   :  { %3660 = dma.done.wait [#allocation10], 2048  }
  0x31   :  { %3661 = vsyncadd [#allocation10], 4294965248  ;;  %v3670_v0 = vmov 0.0   ;;  %vm3671_vm0 = vmmov 0   ;;  %v3750_v1 = vld [vmem:[#allocation3 + $0x78] sm:$0xff]  ;;  %v3752_v2 = vld [vmem:[#allocation3 + $0x70] sm:$0xff] }
  0x32   :  { %2607 = vmatprep.subr.mxu1 %v3670_v0  ;;  %2639 = vmatprep.mubr.msk.f32.mxu1 %vm3671_vm0, %v3670_v0  ;;  %v3756_v3 = vld [vmem:[#allocation3 + $0x68] sm:$0xff]  ;;  %v3763_v5 = vld [vmem:[#allocation3 + $0x60] sm:$0xff]  ;;  %vm105_vm1 = vcmask 130048   ;;  %v3773_v8 = vld [vmem:[#allocation3 + $0x58] sm:$0xff]  ;;  %s3672_s28 = smov [#allocation11]  }
  0x33   :  { %2608 = vmatpush3.msra.mxu1 %v3750_v1  ;;  %v97_v4 = vld [vmem:[%s4777_s1 + $0x8] sm:$0xff]  ;;  %v96_v6 = vld [vmem:[%s4777_s1] sm:$0xff]  ;;  %v3780_v10 = vld [vmem:[#allocation3 + $0x50] sm:$0xff]  ;;  %s2134_s5 = sshll.u32 %s3672_s28, 4  ;;  %s2135_s5 = int_to_ptr.vmem [resolvable:$true] %s2134_s5 }
  0x34   :  { %2609 = vmatprep.subr.mxu1 %v3670_v0  ;;  %2591 = vmatprep.subr.mxu0 %v97_v4  ;;  %v88_v7 = vld [vmem:[%s4776_s0] sm:$0xff]  ;;  %v89_v9 = vld [vmem:[%s4776_s0 + $0x8] sm:$0xff]  ;;  %v3783_v11 = vld [vmem:[#allocation6 + $0x78] sm:$0xff]  ;;  %s3636_s7 = scalar_lea.vmem %s2135_s5, 128  ;;  %p3641_p7 = scmp.lt.s32.totalorder %s2135_s5, %s2135_s5 }
  0x35   :  { %2610 = vmatpush3.msra.mxu1 %v3752_v2  ;;  %2592 = vmatpush3.msra.mxu0 %v97_v4  ;;  %v3788_v12 = vld [vmem:[#allocation3 + $0x48] sm:$0xff]  ;;  %v3791_v13 = vld [vmem:[#allocation6 + $0x70] sm:$0xff]  ;;  %v3796_v14 = vld [vmem:[#allocation3 + $0x40] sm:$0xff]  ;;  %p3637_p6 = scmp.ne.s32.totalorder %s2135_s5, %s3636_s7  ;;  %p3642_p8 = scmp.lt.s32.totalorder %s3636_s7, %s3636_s7 }
  0x36   :  { %2611 = vmatprep.subr.mxu1 %v3670_v0  ;;  %2593 = vmatprep.subr.mxu0 %v96_v6  ;;  %v3799_v15 = vld [vmem:[#allocation6 + $0x68] sm:$0xff]  ;;  %v3804_v16 = vld [vmem:[#allocation3 + $0x38] sm:$0xff]  ;;  %v3807_v17 = vld [vmem:[#allocation6 + $0x60] sm:$0xff] }
  0x37   :  { %2612 = vmatpush3.msra.mxu1 %v3756_v3  ;;  %2594 = vmatpush3.msra.mxu0 %v96_v6  ;;  %v3812_v18 = vld [vmem:[#allocation3 + $0x30] sm:$0xff]  ;;  %v3818_v19 = vld [vmem:[#allocation3 + $0x28] sm:$0xff]  ;;  %v3823_v20 = vld [vmem:[#allocation3 + $0x20] sm:$0xff]  ;;  %p3643_p9 = por %p3642_p8, %p3641_p7 }
  0x38   :  { %2613 = vmatprep.subr.mxu1 %v3670_v0  ;;  %2595 = vmatprep.mubr.msk.f32.mxu0 %vm105_vm1, %v88_v7  ;;  %v3827_v21 = vld [vmem:[#allocation3 + $0x18] sm:$0xff]  ;;  %v3831_v22 = vld [vmem:[#allocation3 + $0x10] sm:$0xff]  ;;  %v3835_v23 = vld [vmem:[#allocation3 + $0x8] sm:$0xff] }
  0x39   :  { %2614 = vmatpush3.msra.mxu1 %v3763_v5  ;;  %2596 = vmatmul.mubr.msk.f32.vlgmr.msra.gmra.mxu0 %vm105_vm1, %v89_v9  ;;  %v3839_v24 = vld [vmem:[#allocation3] sm:$0xff]  ;;  %v3880_v25 = vld [vmem:[#allocation6 + $0x58] sm:$0xff]  ;;  %v3884_v26 = vld [vmem:[#allocation6 + $0x50] sm:$0xff]  ;;  %p3644_p10 = pnand %p3643_p9, %p3637_p6 }
  0x3a   :  { %2615 = vmatprep.subr.mxu1 %v3670_v0  ;;  %2642 = vmatprep.subr.mxu0 %v3670_v0  ;;  %v3886_v27 = vld [vmem:[#allocation6 + $0x48] sm:$0xff]  ;;  %v3892_v28 = vld [vmem:[#allocation6 + $0x40] sm:$0xff]  ;;  %v3896_v29 = vld [vmem:[#allocation6 + $0x38] sm:$0xff] }
  0x3b   :  { %2616 = vmatpush3.msra.mxu1 %v3773_v8  ;;  %2643 = vmatpush3.msra.mxu0 %v3783_v11  ;;  %v90_v30 = vld [vmem:[%s4776_s0 + $0x10] sm:$0xff]  ;;  %v91_v32 = vld [vmem:[%s4776_s0 + $0x18] sm:$0xff]  ;;  %v3910_v33 = vld [vmem:[#allocation6 + $0x28] sm:$0xff] }
  0x3c   :  { %2617 = vmatprep.subr.mxu1 %v3670_v0  ;;  %2644 = vmatprep.subr.mxu0 %v3670_v0  ;;  %v3903_v31 = vld [vmem:[#allocation6 + $0x30] sm:$0xff]  ;;  %v92_v34 = vld [vmem:[%s4776_s0 + $0x20] sm:$0xff]  ;;  %v93_v36 = vld [vmem:[%s4776_s0 + $0x28] sm:$0xff] }
  0x3d   :  { %2618 = vmatpush3.msra.mxu1 %v3780_v10  ;;  %2645 = vmatpush3.msra.mxu0 %v3791_v13  ;;  %v3917_v35 = vld [vmem:[#allocation6 + $0x20] sm:$0xff]  ;;  %v3925_v37 = vld [vmem:[#allocation6 + $0x18] sm:$0xff]  ;;  %v94_v38 = vld [vmem:[%s4776_s0 + $0x30] sm:$0xff] }
  0x3e   :  { %2619 = vmatprep.subr.mxu1 %v3670_v0  ;;  %2646 = vmatprep.subr.mxu0 %v3670_v0  ;;  %v3933_v39 = vld [vmem:[#allocation6 + $0x10] sm:$0xff]  ;;  %v95_v40 = vld [vmem:[%s4776_s0 + $0x38] sm:$0xff]  ;;  %v3941_v41 = vld [vmem:[#allocation6 + $0x8] sm:$0xff] }
  0x3f   :  { %2620 = vmatpush3.msra.mxu1 %v3788_v12  ;;  %2647 = vmatpush3.msra.mxu0 %v3799_v15  ;;  %v3946_v42 = vld [vmem:[#allocation6] sm:$0xff] }
  0x40   :  { %2621 = vmatprep.subr.mxu1 %v3670_v0  ;;  %2648 = vmatprep.subr.mxu0 %v3670_v0  ;;  %v3959_v44 = vld [vmem:[%s4779_s3] ss:$0 sm:$0xff] }
  0x41   :  { %2622 = vmatpush3.msra.mxu1 %v3796_v14  ;;  %2649 = vmatpush3.msra.mxu0 %v3807_v17 }
  0x42   :  { %2623 = vmatprep.subr.mxu1 %v3670_v0  ;;  %2650 = vmatprep.subr.mxu0 %v3670_v0 }
  0x43   :  { %2624 = vmatpush3.msra.mxu1 %v3804_v16  ;;  %2651 = vmatpush3.msra.mxu0 %v3880_v25 }
  0x44   :  { %2625 = vmatprep.subr.mxu1 %v3670_v0  ;;  %2652 = vmatprep.subr.mxu0 %v3670_v0 }
  0x45   :  { %2626 = vmatpush3.msra.mxu1 %v3812_v18  ;;  %2653 = vmatpush3.msra.mxu0 %v3884_v26 }
  0x46   :  { %2627 = vmatprep.subr.mxu1 %v3670_v0  ;;  %2654 = vmatprep.subr.mxu0 %v3670_v0 }
  0x47   :  { %2628 = vmatpush3.msra.mxu1 %v3818_v19  ;;  %2655 = vmatpush3.msra.mxu0 %v3886_v27 }
  0x48   :  { %2629 = vmatprep.subr.mxu1 %v3670_v0  ;;  %2656 = vmatprep.subr.mxu0 %v3670_v0 }
  0x49   :  { %2630 = vmatpush3.msra.mxu1 %v3823_v20  ;;  %2657 = vmatpush3.msra.mxu0 %v3892_v28 }
  0x4a   :  { %2631 = vmatprep.subr.mxu1 %v3670_v0  ;;  %2658 = vmatprep.subr.mxu0 %v3670_v0 }
  0x4b   :  { %2632 = vmatpush3.msra.mxu1 %v3827_v21  ;;  %2659 = vmatpush3.msra.mxu0 %v3896_v29 }
  0x4c   :  { %2633 = vmatprep.subr.mxu1 %v3670_v0  ;;  %2660 = vmatprep.subr.mxu0 %v3670_v0 }
  0x4d   :  { %2634 = vmatpush3.msra.mxu1 %v3831_v22  ;;  %2598 = vmatprep.mubr.msk.f32.mxu0 %vm105_vm1, %v90_v30 }
  0x4e   :  { %2635 = vmatprep.subr.mxu1 %v3670_v0  ;;  %2661 = vmatpush3.msra.mxu0 %v3903_v31 }
  0x4f   :  { %2636 = vmatpush3.msra.mxu1 %v3835_v23  ;;  %2599 = vmatmul.mubr.msk.f32.gmra.mxu0 %vm105_vm1, %v91_v32 }
  0x50   :  { %2637 = vmatprep.subr.mxu1 %v3670_v0  ;;  %2662 = vmatprep.subr.mxu0 %v3670_v0 }
  0x51   :  { %2638 = vmatpush3.msra.mxu1 %v3839_v24  ;;  %2663 = vmatpush3.msra.mxu0 %v3910_v33 }
  0x52   :  { %2640 = vmatmul.mubr.f32.vlgmr.msra.gmra.mxu1 %v3670_v0  ;;  %2677 = vmatprep.subr.mxu1 %v3670_v0 }
  0x53   :  { %2678 = vmatpush3.msra.mxu1 %v3750_v1  ;;  %2709 = vmatprep.mubr.msk.f32.mxu1 %vm3671_vm0, %v3670_v0 }
  0x54   :  { %2679 = vmatprep.subr.mxu1 %v3670_v0  ;;  %2601 = vmatprep.mubr.msk.f32.mxu0 %vm105_vm1, %v92_v34 }
  0x55   :  { %2680 = vmatpush3.msra.mxu1 %v3752_v2  ;;  %2664 = vmatprep.subr.mxu0 %v3670_v0 }
  0x56   :  { %2681 = vmatprep.subr.mxu1 %v3670_v0  ;;  %2665 = vmatpush3.msra.mxu0 %v3917_v35 }
  0x57   :  { %2682 = vmatpush3.msra.mxu1 %v3756_v3  ;;  %2602 = vmatmul.mubr.msk.f32.gmra.mxu0 %vm105_vm1, %v93_v36 }
  0x58   :  { %2683 = vmatprep.subr.mxu1 %v3670_v0  ;;  %2666 = vmatprep.subr.mxu0 %v3670_v0 }
  0x59   :  { %2684 = vmatpush3.msra.mxu1 %v3763_v5  ;;  %2667 = vmatpush3.msra.mxu0 %v3925_v37 }
  0x5a   :  { %2685 = vmatprep.subr.mxu1 %v3670_v0  ;;  %2604 = vmatprep.mubr.msk.f32.mxu0 %vm105_vm1, %v94_v38 }
  0x5b   :  { %2686 = vmatpush3.msra.mxu1 %v3773_v8  ;;  %2668 = vmatprep.subr.mxu0 %v3670_v0 }
  0x5c   :  { %2687 = vmatprep.subr.mxu1 %v3670_v0  ;;  %2669 = vmatpush3.msra.mxu0 %v3933_v39 }
  0x5d   :  { %2688 = vmatpush3.msra.mxu1 %v3780_v10  ;;  %2605 = vmatmul.mubr.msk.f32.gmra.mxu0 %vm105_vm1, %v95_v40 }
  0x5e   :  { %2689 = vmatprep.subr.mxu1 %v3670_v0  ;;  %2670 = vmatprep.subr.mxu0 %v3670_v0 }
  0x5f   :  { %2690 = vmatpush3.msra.mxu1 %v3788_v12  ;;  %2671 = vmatpush3.msra.mxu0 %v3941_v41 }
  0x60   :  { %2691 = vmatprep.subr.mxu1 %v3670_v0  ;;  %2674 = vmatprep.mubr.msk.f32.mxu0 %vm3671_vm0, %v3670_v0 }
  0x61   :  { %2692 = vmatpush3.msra.mxu1 %v3796_v14  ;;  %2672 = vmatprep.subr.mxu0 %v3670_v0 }
  0x62   :  { %2693 = vmatprep.subr.mxu1 %v3670_v0  ;;  %2673 = vmatpush3.msra.mxu0 %v3946_v42 }
  0x63   :  { %2694 = vmatpush3.msra.mxu1 %v3804_v16  ;;  %2712 = vmatprep.subr.mxu0 %v3670_v0 }
  0x64   :  { %2695 = vmatprep.subr.mxu1 %v3670_v0 }
  0x65   :  { %2696 = vmatpush3.msra.mxu1 %v3812_v18 }
  0x66   :  { %2697 = vmatprep.subr.mxu1 %v3670_v0 }
  0x67   :  { %2698 = vmatpush3.msra.mxu1 %v3818_v19 }
  0x68   :  { %2699 = vmatprep.subr.mxu1 %v3670_v0 }
  0x69   :  { %2700 = vmatpush3.msra.mxu1 %v3823_v20 }
  0x6a   :  { %2701 = vmatprep.subr.mxu1 %v3670_v0 }
  0x6b   :  { %2702 = vmatpush3.msra.mxu1 %v3827_v21 }
  0x6c   :  { %2703 = vmatprep.subr.mxu1 %v3670_v0 }
  0x6d   :  { %2704 = vmatpush3.msra.mxu1 %v3831_v22 }
  0x6e   :  { %2705 = vmatprep.subr.mxu1 %v3670_v0 }
  0x6f   :  { %2706 = vmatpush3.msra.mxu1 %v3835_v23 }
  0x70   :  { %2707 = vmatprep.subr.mxu1 %v3670_v0 }
  0x71   :  { %2708 = vmatpush3.msra.mxu1 %v3839_v24 }
  0x72   :  { %2747 = vmatprep.subr.mxu1 %v3670_v0 }
  0xf9   :  { %v3954_v43 = vpop.f32.mrf.mxu0 }
  0xfa   :  { %v202_v57 = vadd.f32 %v3954_v43, %v3959_v44 }
  0xfb   :  { %v196_v45 = vpop.f32.mrf.mxu0 }
  0xfc   :  { %v197_v46 = vadd.f32 %v3959_v44, %v196_v45 }
 0x10f   :  { %v4030_v51 = vpop.f32.mrf.mxu0 }
 0x110   :  { %v212_v36 = vadd.f32 %v4030_v51, %v3959_v44 }
 0x111   :  { %v4032_v52 = vpop.f32.mrf.mxu0 }
 0x112   :  { %v343_v47 = vpop.f32.mrf.mxu1  ;;  %v207_v4 = vadd.f32 %v3959_v44, %v4032_v52 }
 0x113   :  { %v347_v48 = vadd.f32 %v343_v47, %v197_v46 }
 0x114   :  { %v2641_v49 = vpop.f32.mrf.mxu1 }
 0x115   :  { %3491 = vtanh.f32 %v347_v48 }
 0x117   :  { %v4034_v53 = vpop.f32.mrf.mxu0 }
 0x119   :  { %v4036_v54 = vpop.f32.mrf.mxu0 }
 0x11a   :  { %v217_v48 = vadd.f32 %v3959_v44, %v4036_v54 }
 0x11d   :  { %v4038_v55 = vpop.f32.mrf.mxu0 }
 0x11f   :  { %v4040_v56 = vpop.f32.mrf.mxu0 }
 0x122   :  { %v3492_v50 = vpop.eup %3491 }
 0x123   :  { %2675 = vmatmul.mubr.f32.vlgmr.msra.gmra.mxu0 %v3492_v50  ;;  %2710 = vmatmul.mubr.f32.vlgmr.msra.gmra.mxu1 %v3492_v50 }
 0x124   :  { %2713 = vmatpush3.msra.mxu0 %v3783_v11  ;;  %2748 = vmatpush3.msra.mxu1 %v3750_v1 }
 0x125   :  { %2714 = vmatprep.subr.mxu0 %v3670_v0  ;;  %2749 = vmatprep.subr.mxu1 %v3670_v0 }
 0x126   :  { %2715 = vmatpush3.msra.mxu0 %v3791_v13  ;;  %2750 = vmatpush3.msra.mxu1 %v3752_v2 }
 0x127   :  { %2716 = vmatprep.subr.mxu0 %v3670_v0  ;;  %2751 = vmatprep.subr.mxu1 %v3670_v0 }
 0x128   :  { %2717 = vmatpush3.msra.mxu0 %v3799_v15  ;;  %2752 = vmatpush3.msra.mxu1 %v3756_v3 }
 0x129   :  { %2718 = vmatprep.subr.mxu0 %v3670_v0  ;;  %2753 = vmatprep.subr.mxu1 %v3670_v0 }
 0x12a   :  { %2719 = vmatpush3.msra.mxu0 %v3807_v17  ;;  %2754 = vmatpush3.msra.mxu1 %v3763_v5 }
 0x12b   :  { %2720 = vmatprep.subr.mxu0 %v3670_v0  ;;  %2755 = vmatprep.subr.mxu1 %v3670_v0 }
 0x12c   :  { %2721 = vmatpush3.msra.mxu0 %v3880_v25  ;;  %2756 = vmatpush3.msra.mxu1 %v3773_v8 }
 0x12d   :  { %2722 = vmatprep.subr.mxu0 %v3670_v0  ;;  %2757 = vmatprep.subr.mxu1 %v3670_v0 }
 0x12e   :  { %2723 = vmatpush3.msra.mxu0 %v3884_v26  ;;  %2758 = vmatpush3.msra.mxu1 %v3780_v10 }
 0x12f   :  { %2724 = vmatprep.subr.mxu0 %v3670_v0  ;;  %2759 = vmatprep.subr.mxu1 %v3670_v0 }
 0x130   :  { %2725 = vmatpush3.msra.mxu0 %v3886_v27  ;;  %2760 = vmatpush3.msra.mxu1 %v3788_v12 }
 0x131   :  { %2726 = vmatprep.subr.mxu0 %v3670_v0  ;;  %2761 = vmatprep.subr.mxu1 %v3670_v0 }
 0x132   :  { %2727 = vmatpush3.msra.mxu0 %v3892_v28  ;;  %2762 = vmatpush3.msra.mxu1 %v3796_v14 }
 0x133   :  { %2728 = vmatprep.subr.mxu0 %v3670_v0  ;;  %2763 = vmatprep.subr.mxu1 %v3670_v0 }
 0x134   :  { %2729 = vmatpush3.msra.mxu0 %v3896_v29  ;;  %2764 = vmatpush3.msra.mxu1 %v3804_v16 }
 0x135   :  { %2730 = vmatprep.subr.mxu0 %v3670_v0  ;;  %2765 = vmatprep.subr.mxu1 %v3670_v0 }
 0x136   :  { %2731 = vmatpush3.msra.mxu0 %v3903_v31  ;;  %2766 = vmatpush3.msra.mxu1 %v3812_v18 }
 0x137   :  { %2732 = vmatprep.subr.mxu0 %v3670_v0  ;;  %2767 = vmatprep.subr.mxu1 %v3670_v0 }
 0x138   :  { %2733 = vmatpush3.msra.mxu0 %v3910_v33  ;;  %2768 = vmatpush3.msra.mxu1 %v3818_v19 }
 0x139   :  { %2734 = vmatprep.subr.mxu0 %v3670_v0  ;;  %2769 = vmatprep.subr.mxu1 %v3670_v0 }
 0x13a   :  { %2735 = vmatpush3.msra.mxu0 %v3917_v35  ;;  %2770 = vmatpush3.msra.mxu1 %v3823_v20 }
 0x13b   :  { %2736 = vmatprep.subr.mxu0 %v3670_v0  ;;  %2771 = vmatprep.subr.mxu1 %v3670_v0 }
 0x13c   :  { %2737 = vmatpush3.msra.mxu0 %v3925_v37  ;;  %2772 = vmatpush3.msra.mxu1 %v3827_v21 }
 0x13d   :  { %2738 = vmatprep.subr.mxu0 %v3670_v0  ;;  %2773 = vmatprep.subr.mxu1 %v3670_v0 }
 0x13e   :  { %2739 = vmatpush3.msra.mxu0 %v3933_v39  ;;  %2774 = vmatpush3.msra.mxu1 %v3831_v22 }
 0x13f   :  { %2740 = vmatprep.subr.mxu0 %v3670_v0  ;;  %2775 = vmatprep.subr.mxu1 %v3670_v0 }
 0x140   :  { %2741 = vmatpush3.msra.mxu0 %v3941_v41  ;;  %2776 = vmatpush3.msra.mxu1 %v3835_v23 }
 0x141   :  { %2742 = vmatprep.subr.mxu0 %v3670_v0  ;;  %2777 = vmatprep.subr.mxu1 %v3670_v0 }
 0x142   :  { %2743 = vmatpush3.msra.mxu0 %v3946_v42  ;;  %2744 = vmatprep.mubr.msk.f32.mxu0 %vm3671_vm0, %v3670_v0 }
 0x143   :  { %2778 = vmatpush3.msra.mxu1 %v3839_v24  ;;  %2779 = vmatprep.mubr.msk.f32.mxu1 %vm3671_vm0, %v3670_v0 }
 0x144   :  { %2782 = vmatprep.subr.mxu0 %v3670_v0  ;;  %2817 = vmatprep.subr.mxu1 %v3670_v0 }
 0x1e3   :  { %v4044_v58 = vpop.f32.mrf.mxu0  ;;  %v493_v59 = vpop.f32.mrf.mxu1 }
 0x1e4   :  { %v497_v60 = vadd.f32 %v493_v59, %v202_v57 }
 0x1e5   :  { %v2676_v61 = vpop.f32.mrf.mxu0  ;;  %v2711_v62 = vpop.f32.mrf.mxu1 }
 0x1e6   :  { %3493 = vtanh.f32 %v497_v60  ;;  %v4400_v61 = vld [vmem:[#allocation8 + $0x70] sm:$0xff]  ;;  %v4418_v62 = vld [vmem:[#allocation8 + $0x58] sm:$0xff] }
 0x1f3   :  { %v3494_v63 = vpop.eup %3493 }
 0x1f4   :  { %2745 = vmatmul.mubr.f32.vlgmr.msra.gmra.mxu0 %v3494_v63  ;;  %2780 = vmatmul.mubr.f32.vlgmr.msra.gmra.mxu1 %v3494_v63  ;;  %v4424_v63 = vld [vmem:[#allocation8 + $0x50] sm:$0xff] }
 0x1f5   :  { %2783 = vmatpush3.msra.mxu0 %v3783_v11  ;;  %2818 = vmatpush3.msra.mxu1 %v3750_v1 }
 0x1f6   :  { %2784 = vmatprep.subr.mxu0 %v3670_v0  ;;  %2819 = vmatprep.subr.mxu1 %v3670_v0 }
 0x1f7   :  { %2785 = vmatpush3.msra.mxu0 %v3791_v13  ;;  %2820 = vmatpush3.msra.mxu1 %v3752_v2 }
 0x1f8   :  { %2786 = vmatprep.subr.mxu0 %v3670_v0  ;;  %2821 = vmatprep.subr.mxu1 %v3670_v0 }
 0x1f9   :  { %2787 = vmatpush3.msra.mxu0 %v3799_v15  ;;  %2822 = vmatpush3.msra.mxu1 %v3756_v3 }
 0x1fa   :  { %2788 = vmatprep.subr.mxu0 %v3670_v0  ;;  %2823 = vmatprep.subr.mxu1 %v3670_v0 }
 0x1fb   :  { %2789 = vmatpush3.msra.mxu0 %v3807_v17  ;;  %2824 = vmatpush3.msra.mxu1 %v3763_v5 }
 0x1fc   :  { %2790 = vmatprep.subr.mxu0 %v3670_v0  ;;  %2825 = vmatprep.subr.mxu1 %v3670_v0 }
 0x1fd   :  { %2791 = vmatpush3.msra.mxu0 %v3880_v25  ;;  %2826 = vmatpush3.msra.mxu1 %v3773_v8 }
 0x1fe   :  { %2792 = vmatprep.subr.mxu0 %v3670_v0  ;;  %2827 = vmatprep.subr.mxu1 %v3670_v0 }
 0x1ff   :  { %2793 = vmatpush3.msra.mxu0 %v3884_v26  ;;  %2828 = vmatpush3.msra.mxu1 %v3780_v10 }
 0x200   :  { %2794 = vmatprep.subr.mxu0 %v3670_v0  ;;  %2829 = vmatprep.subr.mxu1 %v3670_v0 }
 0x201   :  { %2795 = vmatpush3.msra.mxu0 %v3886_v27  ;;  %2830 = vmatpush3.msra.mxu1 %v3788_v12 }
 0x202   :  { %2796 = vmatprep.subr.mxu0 %v3670_v0  ;;  %2831 = vmatprep.subr.mxu1 %v3670_v0 }
 0x203   :  { %2797 = vmatpush3.msra.mxu0 %v3892_v28  ;;  %2832 = vmatpush3.msra.mxu1 %v3796_v14 }
 0x204   :  { %2798 = vmatprep.subr.mxu0 %v3670_v0  ;;  %2833 = vmatprep.subr.mxu1 %v3670_v0 }
 0x205   :  { %2799 = vmatpush3.msra.mxu0 %v3896_v29  ;;  %2834 = vmatpush3.msra.mxu1 %v3804_v16 }
 0x206   :  { %2800 = vmatprep.subr.mxu0 %v3670_v0  ;;  %2835 = vmatprep.subr.mxu1 %v3670_v0 }
 0x207   :  { %2801 = vmatpush3.msra.mxu0 %v3903_v31  ;;  %2836 = vmatpush3.msra.mxu1 %v3812_v18 }
 0x208   :  { %2802 = vmatprep.subr.mxu0 %v3670_v0  ;;  %2837 = vmatprep.subr.mxu1 %v3670_v0 }
 0x209   :  { %2803 = vmatpush3.msra.mxu0 %v3910_v33  ;;  %2838 = vmatpush3.msra.mxu1 %v3818_v19 }
 0x20a   :  { %2804 = vmatprep.subr.mxu0 %v3670_v0  ;;  %2839 = vmatprep.subr.mxu1 %v3670_v0 }
 0x20b   :  { %2805 = vmatpush3.msra.mxu0 %v3917_v35  ;;  %2840 = vmatpush3.msra.mxu1 %v3823_v20 }
 0x20c   :  { %2806 = vmatprep.subr.mxu0 %v3670_v0  ;;  %2841 = vmatprep.subr.mxu1 %v3670_v0 }
 0x20d   :  { %2807 = vmatpush3.msra.mxu0 %v3925_v37  ;;  %2842 = vmatpush3.msra.mxu1 %v3827_v21 }
 0x20e   :  { %2808 = vmatprep.subr.mxu0 %v3670_v0  ;;  %2843 = vmatprep.subr.mxu1 %v3670_v0 }
 0x20f   :  { %2809 = vmatpush3.msra.mxu0 %v3933_v39  ;;  %2844 = vmatpush3.msra.mxu1 %v3831_v22 }
 0x210   :  { %2810 = vmatprep.subr.mxu0 %v3670_v0  ;;  %2845 = vmatprep.subr.mxu1 %v3670_v0 }
 0x211   :  { %2811 = vmatpush3.msra.mxu0 %v3941_v41  ;;  %2846 = vmatpush3.msra.mxu1 %v3835_v23 }
 0x212   :  { %2812 = vmatprep.subr.mxu0 %v3670_v0  ;;  %2847 = vmatprep.subr.mxu1 %v3670_v0 }
 0x213   :  { %2813 = vmatpush3.msra.mxu0 %v3946_v42  ;;  %2814 = vmatprep.mubr.msk.f32.mxu0 %vm3671_vm0, %v3670_v0 }
 0x214   :  { %2848 = vmatpush3.msra.mxu1 %v3839_v24  ;;  %2849 = vmatprep.mubr.msk.f32.mxu1 %vm3671_vm0, %v3670_v0 }
 0x215   :  { %2852 = vmatprep.subr.mxu0 %v3670_v0  ;;  %2887 = vmatprep.subr.mxu1 %v3670_v0 }
 0x2b4   :  { %v4116_v6 = vpop.f32.mrf.mxu0  ;;  %v637_v7 = vpop.f32.mrf.mxu1 }
 0x2b5   :  { %v641_v9 = vadd.f32 %v637_v7, %v207_v4  ;;  %v4430_v4 = vld [vmem:[#allocation8 + $0x48] sm:$0xff]  ;;  %v3543_v7 = vld [vmem:[#allocation6 + $0x58] sm:$0xff] }
 0x2b6   :  { %v2746_v30 = vpop.f32.mrf.mxu0  ;;  %v2781_v32 = vpop.f32.mrf.mxu1 }
 0x2b7   :  { %3495 = vtanh.f32 %v641_v9  ;;  %v4435_v9 = vld [vmem:[#allocation8 + $0x40] sm:$0xff]  ;;  %v3544_v30 = vld [vmem:[#allocation6 + $0x50] sm:$0xff]  ;;  %v4440_v32 = vld [vmem:[#allocation8 + $0x38] sm:$0xff] }
 0x2c4   :  { %v3496_v34 = vpop.eup %3495 }
 0x2c5   :  { %2815 = vmatmul.mubr.f32.vlgmr.msra.gmra.mxu0 %v3496_v34  ;;  %2850 = vmatmul.mubr.f32.vlgmr.msra.gmra.mxu1 %v3496_v34  ;;  %v3545_v34 = vld [vmem:[#allocation6 + $0x48] sm:$0xff] }
 0x2c6   :  { %2853 = vmatpush3.msra.mxu0 %v3783_v11  ;;  %2888 = vmatpush3.msra.mxu1 %v3750_v1 }
 0x2c7   :  { %2854 = vmatprep.subr.mxu0 %v3670_v0  ;;  %2889 = vmatprep.subr.mxu1 %v3670_v0 }
 0x2c8   :  { %2855 = vmatpush3.msra.mxu0 %v3791_v13  ;;  %2890 = vmatpush3.msra.mxu1 %v3752_v2 }
 0x2c9   :  { %2856 = vmatprep.subr.mxu0 %v3670_v0  ;;  %2891 = vmatprep.subr.mxu1 %v3670_v0 }
 0x2ca   :  { %2857 = vmatpush3.msra.mxu0 %v3799_v15  ;;  %2892 = vmatpush3.msra.mxu1 %v3756_v3 }
 0x2cb   :  { %2858 = vmatprep.subr.mxu0 %v3670_v0  ;;  %2893 = vmatprep.subr.mxu1 %v3670_v0 }
 0x2cc   :  { %2859 = vmatpush3.msra.mxu0 %v3807_v17  ;;  %2894 = vmatpush3.msra.mxu1 %v3763_v5 }
 0x2cd   :  { %2860 = vmatprep.subr.mxu0 %v3670_v0  ;;  %2895 = vmatprep.subr.mxu1 %v3670_v0 }
 0x2ce   :  { %2861 = vmatpush3.msra.mxu0 %v3880_v25  ;;  %2896 = vmatpush3.msra.mxu1 %v3773_v8 }
 0x2cf   :  { %2862 = vmatprep.subr.mxu0 %v3670_v0  ;;  %2897 = vmatprep.subr.mxu1 %v3670_v0 }
 0x2d0   :  { %2863 = vmatpush3.msra.mxu0 %v3884_v26  ;;  %2898 = vmatpush3.msra.mxu1 %v3780_v10 }
 0x2d1   :  { %2864 = vmatprep.subr.mxu0 %v3670_v0  ;;  %2899 = vmatprep.subr.mxu1 %v3670_v0 }
 0x2d2   :  { %2865 = vmatpush3.msra.mxu0 %v3886_v27  ;;  %2900 = vmatpush3.msra.mxu1 %v3788_v12 }
 0x2d3   :  { %2866 = vmatprep.subr.mxu0 %v3670_v0  ;;  %2901 = vmatprep.subr.mxu1 %v3670_v0 }
 0x2d4   :  { %2867 = vmatpush3.msra.mxu0 %v3892_v28  ;;  %2902 = vmatpush3.msra.mxu1 %v3796_v14 }
 0x2d5   :  { %2868 = vmatprep.subr.mxu0 %v3670_v0  ;;  %2903 = vmatprep.subr.mxu1 %v3670_v0 }
 0x2d6   :  { %2869 = vmatpush3.msra.mxu0 %v3896_v29  ;;  %2904 = vmatpush3.msra.mxu1 %v3804_v16 }
 0x2d7   :  { %2870 = vmatprep.subr.mxu0 %v3670_v0  ;;  %2905 = vmatprep.subr.mxu1 %v3670_v0 }
 0x2d8   :  { %2871 = vmatpush3.msra.mxu0 %v3903_v31  ;;  %2906 = vmatpush3.msra.mxu1 %v3812_v18 }
 0x2d9   :  { %2872 = vmatprep.subr.mxu0 %v3670_v0  ;;  %2907 = vmatprep.subr.mxu1 %v3670_v0 }
 0x2da   :  { %2873 = vmatpush3.msra.mxu0 %v3910_v33  ;;  %2908 = vmatpush3.msra.mxu1 %v3818_v19 }
 0x2db   :  { %2874 = vmatprep.subr.mxu0 %v3670_v0  ;;  %2909 = vmatprep.subr.mxu1 %v3670_v0 }
 0x2dc   :  { %2875 = vmatpush3.msra.mxu0 %v3917_v35  ;;  %2910 = vmatpush3.msra.mxu1 %v3823_v20 }
 0x2dd   :  { %2876 = vmatprep.subr.mxu0 %v3670_v0  ;;  %2911 = vmatprep.subr.mxu1 %v3670_v0 }
 0x2de   :  { %2877 = vmatpush3.msra.mxu0 %v3925_v37  ;;  %2912 = vmatpush3.msra.mxu1 %v3827_v21 }
 0x2df   :  { %2878 = vmatprep.subr.mxu0 %v3670_v0  ;;  %2913 = vmatprep.subr.mxu1 %v3670_v0 }
 0x2e0   :  { %2879 = vmatpush3.msra.mxu0 %v3933_v39  ;;  %2914 = vmatpush3.msra.mxu1 %v3831_v22 }
 0x2e1   :  { %2880 = vmatprep.subr.mxu0 %v3670_v0  ;;  %2915 = vmatprep.subr.mxu1 %v3670_v0 }
 0x2e2   :  { %2881 = vmatpush3.msra.mxu0 %v3941_v41  ;;  %2916 = vmatpush3.msra.mxu1 %v3835_v23 }
 0x2e3   :  { %2882 = vmatprep.subr.mxu0 %v3670_v0  ;;  %2917 = vmatprep.subr.mxu1 %v3670_v0 }
 0x2e4   :  { %2883 = vmatpush3.msra.mxu0 %v3946_v42  ;;  %2884 = vmatprep.mubr.msk.f32.mxu0 %vm3671_vm0, %v3670_v0 }
 0x2e5   :  { %2918 = vmatpush3.msra.mxu1 %v3839_v24  ;;  %2919 = vmatprep.mubr.msk.f32.mxu1 %vm3671_vm0, %v3670_v0 }
 0x2e6   :  { %2922 = vmatprep.subr.mxu0 %v3670_v0  ;;  %2957 = vmatprep.subr.mxu1 %v3670_v0 }
 0x385   :  { %v4188_v38 = vpop.f32.mrf.mxu0  ;;  %v781_v40 = vpop.f32.mrf.mxu1 }
 0x386   :  { %v785_v43 = vadd.f32 %v781_v40, %v212_v36  ;;  %v4445_v36 = vld [vmem:[#allocation8 + $0x30] sm:$0xff]  ;;  %v3546_v40 = vld [vmem:[#allocation6 + $0x40] sm:$0xff] }
 0x387   :  { %v2816_v45 = vpop.f32.mrf.mxu0  ;;  %v2851_v46 = vpop.f32.mrf.mxu1 }
 0x388   :  { %3497 = vtanh.f32 %v785_v43  ;;  %v4450_v43 = vld [vmem:[#allocation8 + $0x28] sm:$0xff]  ;;  %v3547_v45 = vld [vmem:[#allocation6 + $0x38] sm:$0xff]  ;;  %v4455_v46 = vld [vmem:[#allocation8 + $0x20] sm:$0xff] }
 0x395   :  { %v3498_v47 = vpop.eup %3497 }
 0x396   :  { %2885 = vmatmul.mubr.f32.vlgmr.msra.gmra.mxu0 %v3498_v47  ;;  %2920 = vmatmul.mubr.f32.vlgmr.msra.gmra.mxu1 %v3498_v47  ;;  %v3548_v47 = vld [vmem:[#allocation6 + $0x30] sm:$0xff] }
 0x397   :  { %2923 = vmatpush3.msra.mxu0 %v3783_v11  ;;  %2958 = vmatpush3.msra.mxu1 %v3750_v1 }
 0x398   :  { %2924 = vmatprep.subr.mxu0 %v3670_v0  ;;  %2959 = vmatprep.subr.mxu1 %v3670_v0 }
 0x399   :  { %2925 = vmatpush3.msra.mxu0 %v3791_v13  ;;  %2960 = vmatpush3.msra.mxu1 %v3752_v2 }
 0x39a   :  { %2926 = vmatprep.subr.mxu0 %v3670_v0  ;;  %2961 = vmatprep.subr.mxu1 %v3670_v0 }
 0x39b   :  { %2927 = vmatpush3.msra.mxu0 %v3799_v15  ;;  %2962 = vmatpush3.msra.mxu1 %v3756_v3 }
 0x39c   :  { %2928 = vmatprep.subr.mxu0 %v3670_v0  ;;  %2963 = vmatprep.subr.mxu1 %v3670_v0 }
 0x39d   :  { %2929 = vmatpush3.msra.mxu0 %v3807_v17  ;;  %2964 = vmatpush3.msra.mxu1 %v3763_v5 }
 0x39e   :  { %2930 = vmatprep.subr.mxu0 %v3670_v0  ;;  %2965 = vmatprep.subr.mxu1 %v3670_v0 }
 0x39f   :  { %2931 = vmatpush3.msra.mxu0 %v3880_v25  ;;  %2966 = vmatpush3.msra.mxu1 %v3773_v8 }
 0x3a0   :  { %2932 = vmatprep.subr.mxu0 %v3670_v0  ;;  %2967 = vmatprep.subr.mxu1 %v3670_v0 }
 0x3a1   :  { %2933 = vmatpush3.msra.mxu0 %v3884_v26  ;;  %2968 = vmatpush3.msra.mxu1 %v3780_v10 }
 0x3a2   :  { %2934 = vmatprep.subr.mxu0 %v3670_v0  ;;  %2969 = vmatprep.subr.mxu1 %v3670_v0 }
 0x3a3   :  { %2935 = vmatpush3.msra.mxu0 %v3886_v27  ;;  %2970 = vmatpush3.msra.mxu1 %v3788_v12 }
 0x3a4   :  { %2936 = vmatprep.subr.mxu0 %v3670_v0  ;;  %2971 = vmatprep.subr.mxu1 %v3670_v0 }
 0x3a5   :  { %2937 = vmatpush3.msra.mxu0 %v3892_v28  ;;  %2972 = vmatpush3.msra.mxu1 %v3796_v14 }
 0x3a6   :  { %2938 = vmatprep.subr.mxu0 %v3670_v0  ;;  %2973 = vmatprep.subr.mxu1 %v3670_v0 }
 0x3a7   :  { %2939 = vmatpush3.msra.mxu0 %v3896_v29  ;;  %2974 = vmatpush3.msra.mxu1 %v3804_v16 }
 0x3a8   :  { %2940 = vmatprep.subr.mxu0 %v3670_v0  ;;  %2975 = vmatprep.subr.mxu1 %v3670_v0 }
 0x3a9   :  { %2941 = vmatpush3.msra.mxu0 %v3903_v31  ;;  %2976 = vmatpush3.msra.mxu1 %v3812_v18 }
 0x3aa   :  { %2942 = vmatprep.subr.mxu0 %v3670_v0  ;;  %2977 = vmatprep.subr.mxu1 %v3670_v0 }
 0x3ab   :  { %2943 = vmatpush3.msra.mxu0 %v3910_v33  ;;  %2978 = vmatpush3.msra.mxu1 %v3818_v19 }
 0x3ac   :  { %2944 = vmatprep.subr.mxu0 %v3670_v0  ;;  %2979 = vmatprep.subr.mxu1 %v3670_v0 }
 0x3ad   :  { %2945 = vmatpush3.msra.mxu0 %v3917_v35  ;;  %2980 = vmatpush3.msra.mxu1 %v3823_v20 }
 0x3ae   :  { %2946 = vmatprep.subr.mxu0 %v3670_v0  ;;  %2981 = vmatprep.subr.mxu1 %v3670_v0 }
 0x3af   :  { %2947 = vmatpush3.msra.mxu0 %v3925_v37  ;;  %2982 = vmatpush3.msra.mxu1 %v3827_v21 }
 0x3b0   :  { %2948 = vmatprep.subr.mxu0 %v3670_v0  ;;  %2983 = vmatprep.subr.mxu1 %v3670_v0 }
 0x3b1   :  { %2949 = vmatpush3.msra.mxu0 %v3933_v39  ;;  %2984 = vmatpush3.msra.mxu1 %v3831_v22 }
 0x3b2   :  { %2950 = vmatprep.subr.mxu0 %v3670_v0  ;;  %2985 = vmatprep.subr.mxu1 %v3670_v0 }
 0x3b3   :  { %2951 = vmatpush3.msra.mxu0 %v3941_v41  ;;  %2986 = vmatpush3.msra.mxu1 %v3835_v23 }
 0x3b4   :  { %2952 = vmatprep.subr.mxu0 %v3670_v0  ;;  %2987 = vmatprep.subr.mxu1 %v3670_v0 }
 0x3b5   :  { %2953 = vmatpush3.msra.mxu0 %v3946_v42  ;;  %2954 = vmatprep.mubr.msk.f32.mxu0 %vm3671_vm0, %v3670_v0 }
 0x3b6   :  { %2988 = vmatpush3.msra.mxu1 %v3839_v24  ;;  %2989 = vmatprep.mubr.msk.f32.mxu1 %vm3671_vm0, %v3670_v0 }
 0x3b7   :  { %2992 = vmatprep.subr.mxu0 %v3670_v0  ;;  %3027 = vmatprep.subr.mxu1 %v3670_v0 }
 0x456   :  { %v4260_v49 = vpop.f32.mrf.mxu0  ;;  %v925_v50 = vpop.f32.mrf.mxu1 }
 0x457   :  { %v929_v51 = vadd.f32 %v925_v50, %v217_v48  ;;  %v4460_v48 = vld [vmem:[#allocation8 + $0x18] sm:$0xff]  ;;  %v3549_v50 = vld [vmem:[#allocation6 + $0x28] sm:$0xff] }
 0x458   :  { %v2886_v52 = vpop.f32.mrf.mxu0  ;;  %v2921_v57 = vpop.f32.mrf.mxu1 }
 0x459   :  { %3499 = vtanh.f32 %v929_v51  ;;  %v4465_v51 = vld [vmem:[#allocation8 + $0x10] sm:$0xff]  ;;  %v3550_v52 = vld [vmem:[#allocation6 + $0x20] sm:$0xff]  ;;  %v4470_v57 = vld [vmem:[#allocation8 + $0x8] sm:$0xff] }
 0x466   :  { %v3500_v59 = vpop.eup %3499 }
 0x467   :  { %2955 = vmatmul.mubr.f32.vlgmr.msra.gmra.mxu0 %v3500_v59  ;;  %2990 = vmatmul.mubr.f32.vlgmr.msra.gmra.mxu1 %v3500_v59  ;;  %v3551_v59 = vld [vmem:[#allocation6 + $0x18] sm:$0xff] }
 0x468   :  { %2993 = vmatpush3.msra.mxu0 %v3783_v11  ;;  %3028 = vmatpush3.msra.mxu1 %v3750_v1  ;;  %v222_v1 = vadd.f32 %v4034_v53, %v3959_v44 }
 0x469   :  { %2994 = vmatprep.subr.mxu0 %v3670_v0  ;;  %3029 = vmatprep.subr.mxu1 %v3670_v0 }
 0x46a   :  { %2995 = vmatpush3.msra.mxu0 %v3791_v13  ;;  %3030 = vmatpush3.msra.mxu1 %v3752_v2  ;;  %v4334_v13 = vld [vmem:[#allocation6 + $0x78] sm:$0xff] }
 0x46b   :  { %2996 = vmatprep.subr.mxu0 %v3670_v0  ;;  %3031 = vmatprep.subr.mxu1 %v3670_v0 }
 0x46c   :  { %2997 = vmatpush3.msra.mxu0 %v3799_v15  ;;  %3032 = vmatpush3.msra.mxu1 %v3756_v3  ;;  %v4339_v15 = vld [vmem:[#allocation6 + $0x70] sm:$0xff] }
 0x46d   :  { %2998 = vmatprep.subr.mxu0 %v3670_v0  ;;  %3033 = vmatprep.subr.mxu1 %v3670_v0 }
 0x46e   :  { %2999 = vmatpush3.msra.mxu0 %v3807_v17  ;;  %3034 = vmatpush3.msra.mxu1 %v3763_v5  ;;  %v4344_v17 = vld [vmem:[#allocation6 + $0x68] sm:$0xff] }
 0x46f   :  { %3000 = vmatprep.subr.mxu0 %v3670_v0  ;;  %3035 = vmatprep.subr.mxu1 %v3670_v0 }
 0x470   :  { %3001 = vmatpush3.msra.mxu0 %v3880_v25  ;;  %3036 = vmatpush3.msra.mxu1 %v3773_v8 }
 0x471   :  { %3002 = vmatprep.subr.mxu0 %v3670_v0  ;;  %3037 = vmatprep.subr.mxu1 %v3670_v0 }
 0x472   :  { %3003 = vmatpush3.msra.mxu0 %v3884_v26  ;;  %3038 = vmatpush3.msra.mxu1 %v3780_v10 }
 0x473   :  { %3004 = vmatprep.subr.mxu0 %v3670_v0  ;;  %3039 = vmatprep.subr.mxu1 %v3670_v0 }
 0x474   :  { %3005 = vmatpush3.msra.mxu0 %v3886_v27  ;;  %3040 = vmatpush3.msra.mxu1 %v3788_v12  ;;  %v3523_v12 = vld [vmem:[#allocation3 + $0x78] sm:$0xff] }
 0x475   :  { %3006 = vmatprep.subr.mxu0 %v3670_v0  ;;  %3041 = vmatprep.subr.mxu1 %v3670_v0 }
 0x476   :  { %3007 = vmatpush3.msra.mxu0 %v3892_v28  ;;  %3042 = vmatpush3.msra.mxu1 %v3796_v14  ;;  %v3525_v14 = vld [vmem:[#allocation3 + $0x70] sm:$0xff] }
 0x477   :  { %3008 = vmatprep.subr.mxu0 %v3670_v0  ;;  %3043 = vmatprep.subr.mxu1 %v3670_v0 }
 0x478   :  { %3009 = vmatpush3.msra.mxu0 %v3896_v29  ;;  %3044 = vmatpush3.msra.mxu1 %v3804_v16  ;;  %v3527_v16 = vld [vmem:[#allocation3 + $0x68] sm:$0xff] }
 0x479   :  { %3010 = vmatprep.subr.mxu0 %v3670_v0  ;;  %3045 = vmatprep.subr.mxu1 %v3670_v0 }
 0x47a   :  { %3011 = vmatpush3.msra.mxu0 %v3903_v31  ;;  %3046 = vmatpush3.msra.mxu1 %v3812_v18  ;;  %v3529_v18 = vld [vmem:[#allocation3 + $0x60] sm:$0xff] }
 0x47b   :  { %3012 = vmatprep.subr.mxu0 %v3670_v0  ;;  %3047 = vmatprep.subr.mxu1 %v3670_v0 }
 0x47c   :  { %3013 = vmatpush3.msra.mxu0 %v3910_v33  ;;  %3048 = vmatpush3.msra.mxu1 %v3818_v19  ;;  %v4349_v19 = vld [vmem:[#allocation6 + $0x60] sm:$0xff] }
 0x47d   :  { %3014 = vmatprep.subr.mxu0 %v3670_v0  ;;  %3049 = vmatprep.subr.mxu1 %v3670_v0 }
 0x47e   :  { %3015 = vmatpush3.msra.mxu0 %v3917_v35  ;;  %3050 = vmatpush3.msra.mxu1 %v3823_v20  ;;  %v3531_v20 = vld [vmem:[#allocation3 + $0x58] sm:$0xff] }
 0x47f   :  { %3016 = vmatprep.subr.mxu0 %v3670_v0  ;;  %3051 = vmatprep.subr.mxu1 %v3670_v0 }
 0x480   :  { %3017 = vmatpush3.msra.mxu0 %v3925_v37  ;;  %3052 = vmatpush3.msra.mxu1 %v3827_v21  ;;  %v3532_v21 = vld [vmem:[#allocation3 + $0x50] sm:$0xff] }
 0x481   :  { %3018 = vmatprep.subr.mxu0 %v3670_v0  ;;  %3053 = vmatprep.subr.mxu1 %v3670_v0 }
 0x482   :  { %3019 = vmatpush3.msra.mxu0 %v3933_v39  ;;  %3054 = vmatpush3.msra.mxu1 %v3831_v22  ;;  %v3533_v22 = vld [vmem:[#allocation3 + $0x48] sm:$0xff] }
 0x483   :  { %3020 = vmatprep.subr.mxu0 %v3670_v0  ;;  %3055 = vmatprep.subr.mxu1 %v3670_v0 }
 0x484   :  { %3021 = vmatpush3.msra.mxu0 %v3941_v41  ;;  %3056 = vmatpush3.msra.mxu1 %v3835_v23  ;;  %v3534_v23 = vld [vmem:[#allocation3 + $0x40] sm:$0xff] }
 0x485   :  { %3022 = vmatprep.subr.mxu0 %v3670_v0  ;;  %3057 = vmatprep.subr.mxu1 %v3670_v0 }
 0x486   :  { %3023 = vmatpush3.msra.mxu0 %v3946_v42  ;;  %3024 = vmatprep.mubr.msk.f32.mxu0 %vm3671_vm0, %v3670_v0 }
 0x487   :  { %3058 = vmatpush3.msra.mxu1 %v3839_v24  ;;  %3059 = vmatprep.mubr.msk.f32.mxu1 %vm3671_vm0, %v3670_v0  ;;  %v3535_v24 = vld [vmem:[#allocation3 + $0x38] sm:$0xff] }
 0x488   :  { %3097 = vmatprep.subr.mxu1 %v3670_v0  ;;  %3062 = vmatprep.subr.mxu0 %v3670_v0 }
 0x527   :  { %v4332_v2 = vpop.f32.mrf.mxu0  ;;  %v1069_v3 = vpop.f32.mrf.mxu1 }
 0x528   :  { %v1073_v5 = vadd.f32 %v1069_v3, %v222_v1  ;;  %v4475_v1 = vld [vmem:[#allocation8] sm:$0xff]  ;;  %v3552_v3 = vld [vmem:[#allocation6 + $0x10] sm:$0xff] }
 0x529   :  { %v2956_v8 = vpop.f32.mrf.mxu0  ;;  %v2991_v10 = vpop.f32.mrf.mxu1 }
 0x52a   :  { %3501 = vtanh.f32 %v1073_v5  ;;  %v3553_v5 = vld [vmem:[#allocation6 + $0x8] sm:$0xff]  ;;  %v3554_v8 = vld [vmem:[#allocation6] sm:$0xff] }
 0x52b   :  { %v3555_v10 = vld [vmem:[%s4779_s3] ss:$0 sm:$0xff] }
 0x537   :  { %v3502_v11 = vpop.eup %3501 }
 0x538   :  { %3025 = vmatmul.mubr.f32.vlgmr.msra.gmra.mxu0 %v3502_v11  ;;  %3060 = vmatmul.mubr.f32.vlgmr.msra.gmra.mxu1 %v3502_v11  ;;  %v232_v11 = vadd.f32 %v3555_v10, %v4038_v55  ;;  %v4542_v55 = vld [vmem:[%s4782_s6] ss:$0 sm:$0xff] }
 0x539   :  { %3098 = vmatpush3.msra.mxu1 %v3523_v12  ;;  %3063 = vmatpush3.msra.mxu0 %v4334_v13 }
 0x53a   :  { %3099 = vmatprep.subr.mxu1 %v3670_v0  ;;  %3064 = vmatprep.subr.mxu0 %v3670_v0 }
 0x53b   :  { %3100 = vmatpush3.msra.mxu1 %v3525_v14  ;;  %3065 = vmatpush3.msra.mxu0 %v4339_v15 }
 0x53c   :  { %3101 = vmatprep.subr.mxu1 %v3670_v0  ;;  %3066 = vmatprep.subr.mxu0 %v3670_v0 }
 0x53d   :  { %3102 = vmatpush3.msra.mxu1 %v3527_v16  ;;  %3067 = vmatpush3.msra.mxu0 %v4344_v17 }
 0x53e   :  { %3103 = vmatprep.subr.mxu1 %v3670_v0  ;;  %3068 = vmatprep.subr.mxu0 %v3670_v0 }
 0x53f   :  { %3104 = vmatpush3.msra.mxu1 %v3529_v18  ;;  %3069 = vmatpush3.msra.mxu0 %v4349_v19  ;;  %v422_v18 = vadd.f32 %v4542_v55, %v4044_v58 }
 0x540   :  { %3105 = vmatprep.subr.mxu1 %v3670_v0  ;;  %3070 = vmatprep.subr.mxu0 %v3670_v0 }
 0x541   :  { %3106 = vmatpush3.msra.mxu1 %v3531_v20  ;;  %3071 = vmatpush3.msra.mxu0 %v3880_v25  ;;  %v3536_v25 = vld [vmem:[#allocation3 + $0x30] sm:$0xff] }
 0x542   :  { %3107 = vmatprep.subr.mxu1 %v3670_v0  ;;  %3072 = vmatprep.subr.mxu0 %v3670_v0 }
 0x543   :  { %3108 = vmatpush3.msra.mxu1 %v3532_v21  ;;  %3073 = vmatpush3.msra.mxu0 %v3884_v26  ;;  %v3537_v26 = vld [vmem:[#allocation3 + $0x28] sm:$0xff] }
 0x544   :  { %3109 = vmatprep.subr.mxu1 %v3670_v0  ;;  %3074 = vmatprep.subr.mxu0 %v3670_v0 }
 0x545   :  { %3110 = vmatpush3.msra.mxu1 %v3533_v22  ;;  %3075 = vmatpush3.msra.mxu0 %v3886_v27  ;;  %v3538_v27 = vld [vmem:[#allocation3 + $0x20] sm:$0xff] }
 0x546   :  { %3111 = vmatprep.subr.mxu1 %v3670_v0  ;;  %3076 = vmatprep.subr.mxu0 %v3670_v0 }
 0x547   :  { %3112 = vmatpush3.msra.mxu1 %v3534_v23  ;;  %3077 = vmatpush3.msra.mxu0 %v3892_v28  ;;  %v3539_v28 = vld [vmem:[#allocation3 + $0x18] sm:$0xff] }
 0x548   :  { %3113 = vmatprep.subr.mxu1 %v3670_v0  ;;  %3078 = vmatprep.subr.mxu0 %v3670_v0 }
 0x549   :  { %3114 = vmatpush3.msra.mxu1 %v3535_v24  ;;  %3079 = vmatpush3.msra.mxu0 %v3896_v29  ;;  %v3540_v29 = vld [vmem:[#allocation3 + $0x10] sm:$0xff]  ;;  %v566_v24 = vadd.f32 %v4542_v55, %v4116_v6  ;;  %v710_v6 = vadd.f32 %v4542_v55, %v4188_v38  ;;  %v854_v38 = vadd.f32 %v4542_v55, %v4260_v49 }
 0x54a   :  { %3115 = vmatprep.subr.mxu1 %v3670_v0  ;;  %3080 = vmatprep.subr.mxu0 %v3670_v0  ;;  %v998_v49 = vadd.f32 %v4542_v55, %v4332_v2 }
 0x54b   :  { %3116 = vmatpush3.msra.mxu1 %v3536_v25  ;;  %3081 = vmatpush3.msra.mxu0 %v3903_v31  ;;  %v3541_v31 = vld [vmem:[#allocation3 + $0x8] sm:$0xff] }
 0x54c   :  { %3117 = vmatprep.subr.mxu1 %v3670_v0  ;;  %3082 = vmatprep.subr.mxu0 %v3670_v0 }
 0x54d   :  { %3118 = vmatpush3.msra.mxu1 %v3537_v26  ;;  %3083 = vmatpush3.msra.mxu0 %v3910_v33  ;;  %v3542_v33 = vld [vmem:[#allocation3] sm:$0xff] }
 0x54e   :  { %3119 = vmatprep.subr.mxu1 %v3670_v0  ;;  %3084 = vmatprep.subr.mxu0 %v3670_v0 }
 0x54f   :  { %3120 = vmatpush3.msra.mxu1 %v3538_v27  ;;  %3085 = vmatpush3.msra.mxu0 %v3917_v35  ;;  %v227_v35 = vadd.f32 %v3959_v44, %v4040_v56  ;;  %v4406_v44 = vld [vmem:[#allocation8 + $0x68] sm:$0xff]  ;;  %v4412_v56 = vld [vmem:[#allocation8 + $0x60] sm:$0xff] }
 0x550   :  { %3121 = vmatprep.subr.mxu1 %v3670_v0  ;;  %3086 = vmatprep.subr.mxu0 %v3670_v0 }
 0x551   :  { %3122 = vmatpush3.msra.mxu1 %v3539_v28  ;;  %3087 = vmatpush3.msra.mxu0 %v3925_v37 }
 0x552   :  { %3123 = vmatprep.subr.mxu1 %v3670_v0  ;;  %3088 = vmatprep.subr.mxu0 %v3670_v0 }
 0x553   :  { %3124 = vmatpush3.msra.mxu1 %v3540_v29  ;;  %3089 = vmatpush3.msra.mxu0 %v3933_v39 }
 0x554   :  { %3125 = vmatprep.subr.mxu1 %v3670_v0  ;;  %3090 = vmatprep.subr.mxu0 %v3670_v0 }
 0x555   :  { %3126 = vmatpush3.msra.mxu1 %v3541_v31  ;;  %3091 = vmatpush3.msra.mxu0 %v3941_v41 }
 0x556   :  { %3127 = vmatprep.subr.mxu1 %v3670_v0  ;;  %3092 = vmatprep.subr.mxu0 %v3670_v0 }
 0x557   :  { %3128 = vmatpush3.msra.mxu1 %v3542_v33  ;;  %3093 = vmatpush3.msra.mxu0 %v3946_v42  ;;  %v4398_v42 = vld [vmem:[#allocation8 + $0x78] sm:$0xff] }
 0x558   :  { %3094 = vmatprep.mubr.msk.f32.mxu0 %vm3671_vm0, %v3670_v0  ;;  %3129 = vmatprep.mubr.msk.f32.mxu1 %vm3671_vm0, %v3670_v0 }
 0x559   :  { %3167 = vmatprep.subr.mxu1 %v3670_v0  ;;  %3132 = vmatprep.subr.mxu0 %v3670_v0 }
 0x5f8   :  { %v4396_v37 = vpop.f32.mrf.mxu0  ;;  %v1213_v39 = vpop.f32.mrf.mxu1 }
 0x5f9   :  { %v1217_v41 = vadd.f32 %v1213_v39, %v227_v35  ;;  %v1142_v2 = vadd.f32 %v4542_v55, %v4396_v37  ;;  %v2045_v37 = vld [vmem:[#allocation9 + $0x58] sm:$0xff] }
 0x5fa   :  { %v3026_v53 = vpop.f32.mrf.mxu0  ;;  %v3061_v54 = vpop.f32.mrf.mxu1 }
 0x5fb   :  { %3503 = vtanh.f32 %v1217_v41 }
 0x608   :  { %v3504_v60 = vpop.eup %3503 }
 0x609   :  { %3095 = vmatmul.mubr.f32.vlgmr.msra.gmra.mxu0 %v3504_v60  ;;  %3130 = vmatmul.mubr.f32.vlgmr.msra.gmra.mxu1 %v3504_v60 }
 0x60a   :  { %3168 = vmatpush3.msra.mxu1 %v4398_v42  ;;  %3199 = vmatprep.mubr.msk.f32.mxu1 %vm3671_vm0, %v3670_v0 }
 0x60b   :  { %3169 = vmatprep.subr.mxu1 %v3670_v0  ;;  %3133 = vmatpush3.msra.mxu0 %v4334_v13 }
 0x60c   :  { %3170 = vmatpush3.msra.mxu1 %v4400_v61  ;;  %3134 = vmatprep.subr.mxu0 %v3670_v0 }
 0x60d   :  { %3171 = vmatprep.subr.mxu1 %v3670_v0  ;;  %3135 = vmatpush3.msra.mxu0 %v4339_v15 }
 0x60e   :  { %3172 = vmatpush3.msra.mxu1 %v4406_v44  ;;  %3136 = vmatprep.subr.mxu0 %v3670_v0 }
 0x60f   :  { %3173 = vmatprep.subr.mxu1 %v3670_v0  ;;  %3137 = vmatpush3.msra.mxu0 %v4344_v17 }
 0x610   :  { %3174 = vmatpush3.msra.mxu1 %v4412_v56  ;;  %3138 = vmatprep.subr.mxu0 %v3670_v0 }
 0x611   :  { %3175 = vmatprep.subr.mxu1 %v3670_v0  ;;  %3139 = vmatpush3.msra.mxu0 %v4349_v19 }
 0x612   :  { %3176 = vmatpush3.msra.mxu1 %v4418_v62  ;;  %3140 = vmatprep.subr.mxu0 %v3670_v0 }
 0x613   :  { %3177 = vmatprep.subr.mxu1 %v3670_v0  ;;  %3141 = vmatpush3.msra.mxu0 %v3543_v7 }
 0x614   :  { %3178 = vmatpush3.msra.mxu1 %v4424_v63  ;;  %3142 = vmatprep.subr.mxu0 %v3670_v0 }
 0x615   :  { %3179 = vmatprep.subr.mxu1 %v3670_v0  ;;  %3143 = vmatpush3.msra.mxu0 %v3544_v30 }
 0x616   :  { %3180 = vmatpush3.msra.mxu1 %v4430_v4  ;;  %3144 = vmatprep.subr.mxu0 %v3670_v0 }
 0x617   :  { %3181 = vmatprep.subr.mxu1 %v3670_v0  ;;  %3145 = vmatpush3.msra.mxu0 %v3545_v34 }
 0x618   :  { %3182 = vmatpush3.msra.mxu1 %v4435_v9  ;;  %3146 = vmatprep.subr.mxu0 %v3670_v0 }
 0x619   :  { %3183 = vmatprep.subr.mxu1 %v3670_v0  ;;  %3147 = vmatpush3.msra.mxu0 %v3546_v40 }
 0x61a   :  { %3184 = vmatpush3.msra.mxu1 %v4440_v32  ;;  %3148 = vmatprep.subr.mxu0 %v3670_v0 }
 0x61b   :  { %3185 = vmatprep.subr.mxu1 %v3670_v0  ;;  %3149 = vmatpush3.msra.mxu0 %v3547_v45 }
 0x61c   :  { %3186 = vmatpush3.msra.mxu1 %v4445_v36  ;;  %3150 = vmatprep.subr.mxu0 %v3670_v0 }
 0x61d   :  { %3187 = vmatprep.subr.mxu1 %v3670_v0  ;;  %3151 = vmatpush3.msra.mxu0 %v3548_v47 }
 0x61e   :  { %3188 = vmatpush3.msra.mxu1 %v4450_v43  ;;  %3152 = vmatprep.subr.mxu0 %v3670_v0 }
 0x61f   :  { %3189 = vmatprep.subr.mxu1 %v3670_v0  ;;  %3153 = vmatpush3.msra.mxu0 %v3549_v50  ;;  %v2041_v50 = vld [vmem:[#allocation9 + $0x38] sm:$0xff] }
 0x620   :  { %3190 = vmatpush3.msra.mxu1 %v4455_v46  ;;  %3154 = vmatprep.subr.mxu0 %v3670_v0 }
 0x621   :  { %3191 = vmatprep.subr.mxu1 %v3670_v0  ;;  %3155 = vmatpush3.msra.mxu0 %v3550_v52  ;;  %v2039_v52 = vld [vmem:[#allocation9 + $0x28] sm:$0xff] }
 0x622   :  { %3192 = vmatpush3.msra.mxu1 %v4460_v48  ;;  %3156 = vmatprep.subr.mxu0 %v3670_v0 }
 0x623   :  { %3193 = vmatprep.subr.mxu1 %v3670_v0  ;;  %3157 = vmatpush3.msra.mxu0 %v3551_v59  ;;  %v2037_v59 = vld [vmem:[#allocation9 + $0x18] sm:$0xff] }
 0x624   :  { %3194 = vmatpush3.msra.mxu1 %v4465_v51  ;;  %3158 = vmatprep.subr.mxu0 %v3670_v0 }
 0x625   :  { %3195 = vmatprep.subr.mxu1 %v3670_v0  ;;  %3159 = vmatpush3.msra.mxu0 %v3552_v3  ;;  %v2035_v3 = vld [vmem:[#allocation9 + $0x8] sm:$0xff] }
 0x626   :  { %3196 = vmatpush3.msra.mxu1 %v4470_v57  ;;  %3160 = vmatprep.subr.mxu0 %v3670_v0 }
 0x627   :  { %3197 = vmatprep.subr.mxu1 %v3670_v0  ;;  %3161 = vmatpush3.msra.mxu0 %v3553_v5  ;;  %v2034_v5 = vld [vmem:[#allocation9] sm:$0xff] }
 0x628   :  { %3198 = vmatpush3.msra.mxu1 %v4475_v1  ;;  %3162 = vmatprep.subr.mxu0 %v3670_v0 }
 0x629   :  { %3200 = vmatmul.mubr.f32.vlgmr.msra.gmra.mxu1 %v3670_v0  ;;  %3163 = vmatpush3.msra.mxu0 %v3554_v8 }
 0x62a   :  { %3164 = vmatprep.mubr.msk.f32.mxu0 %vm3671_vm0, %v3670_v0  ;;  %3202 = vmatprep.subr.mxu0 %v3670_v0 }
 0x62b   :  { %3237 = vmatprep.subr.mxu1 %v3670_v0  ;;  %3269 = vmatprep.mubr.msk.f32.mxu1 %vm3671_vm0, %v3670_v0 }
 0x62c   :  { %3238 = vmatpush3.msra.mxu1 %v4398_v42 }
 0x62d   :  { %3239 = vmatprep.subr.mxu1 %v3670_v0 }
 0x62e   :  { %3240 = vmatpush3.msra.mxu1 %v4400_v61 }
 0x62f   :  { %3241 = vmatprep.subr.mxu1 %v3670_v0 }
 0x630   :  { %3242 = vmatpush3.msra.mxu1 %v4406_v44 }
 0x631   :  { %3243 = vmatprep.subr.mxu1 %v3670_v0 }
 0x632   :  { %3244 = vmatpush3.msra.mxu1 %v4412_v56 }
 0x633   :  { %3245 = vmatprep.subr.mxu1 %v3670_v0 }
 0x634   :  { %3246 = vmatpush3.msra.mxu1 %v4418_v62 }
 0x635   :  { %3247 = vmatprep.subr.mxu1 %v3670_v0 }
 0x636   :  { %3248 = vmatpush3.msra.mxu1 %v4424_v63 }
 0x637   :  { %3249 = vmatprep.subr.mxu1 %v3670_v0 }
 0x638   :  { %3250 = vmatpush3.msra.mxu1 %v4430_v4 }
 0x639   :  { %3251 = vmatprep.subr.mxu1 %v3670_v0 }
 0x63a   :  { %3252 = vmatpush3.msra.mxu1 %v4435_v9 }
 0x63b   :  { %3253 = vmatprep.subr.mxu1 %v3670_v0 }
 0x63c   :  { %3254 = vmatpush3.msra.mxu1 %v4440_v32 }
 0x63d   :  { %3255 = vmatprep.subr.mxu1 %v3670_v0 }
 0x63e   :  { %3256 = vmatpush3.msra.mxu1 %v4445_v36 }
 0x63f   :  { %3257 = vmatprep.subr.mxu1 %v3670_v0 }
 0x640   :  { %3258 = vmatpush3.msra.mxu1 %v4450_v43 }
 0x641   :  { %3259 = vmatprep.subr.mxu1 %v3670_v0 }
 0x642   :  { %3260 = vmatpush3.msra.mxu1 %v4455_v46 }
 0x643   :  { %3261 = vmatprep.subr.mxu1 %v3670_v0 }
 0x644   :  { %3262 = vmatpush3.msra.mxu1 %v4460_v48 }
 0x645   :  { %3263 = vmatprep.subr.mxu1 %v3670_v0 }
 0x646   :  { %3264 = vmatpush3.msra.mxu1 %v4465_v51 }
 0x647   :  { %3265 = vmatprep.subr.mxu1 %v3670_v0 }
 0x648   :  { %3266 = vmatpush3.msra.mxu1 %v4470_v57 }
 0x649   :  { %3267 = vmatprep.subr.mxu1 %v3670_v0 }
 0x64a   :  { %3268 = vmatpush3.msra.mxu1 %v4475_v1 }
 0x64b   :  { %3307 = vmatprep.subr.mxu1 %v3670_v0 }
 0x6c9   :  { %v4525_v12 = vpop.f32.mrf.mxu0  ;;  %v1357_v13 = vpop.f32.mrf.mxu1 }
 0x6ca   :  { %v1361_v14 = vadd.f32 %v1357_v13, %v232_v11  ;;  %v1286_v40 = vadd.f32 %v4542_v55, %v4525_v12 }
 0x6cb   :  { %v3096_v15 = vpop.f32.mrf.mxu0  ;;  %v3131_v16 = vpop.f32.mrf.mxu1 }
 0x6cc   :  { %3505 = vtanh.f32 %v1361_v14  ;;  %v2155_v14 = vld [vmem:[%s4784_s8] ss:$0 sm:$0xff] }
 0x6d9   :  { %v3506_v17 = vpop.eup %3505 }
 0x6da   :  { %3165 = vmatmul.mubr.f32.vlgmr.msra.gmra.mxu0 %v3506_v17 }
 0x6db   :  { %3203 = vmatpush3.msra.mxu0 %v4398_v42  ;;  %3234 = vmatprep.mubr.msk.f32.mxu0 %vm3671_vm0, %v3670_v0 }
 0x6dc   :  { %3204 = vmatprep.subr.mxu0 %v3670_v0 }
 0x6dd   :  { %3205 = vmatpush3.msra.mxu0 %v4400_v61 }
 0x6de   :  { %3206 = vmatprep.subr.mxu0 %v3670_v0 }
 0x6df   :  { %3207 = vmatpush3.msra.mxu0 %v4406_v44 }
 0x6e0   :  { %3208 = vmatprep.subr.mxu0 %v3670_v0 }
 0x6e1   :  { %3209 = vmatpush3.msra.mxu0 %v4412_v56 }
 0x6e2   :  { %3210 = vmatprep.subr.mxu0 %v3670_v0 }
 0x6e3   :  { %3211 = vmatpush3.msra.mxu0 %v4418_v62 }
 0x6e4   :  { %3212 = vmatprep.subr.mxu0 %v3670_v0 }
 0x6e5   :  { %3213 = vmatpush3.msra.mxu0 %v4424_v63 }
 0x6e6   :  { %3214 = vmatprep.subr.mxu0 %v3670_v0 }
 0x6e7   :  { %3215 = vmatpush3.msra.mxu0 %v4430_v4 }
 0x6e8   :  { %3216 = vmatprep.subr.mxu0 %v3670_v0 }
 0x6e9   :  { %v1517_v19 = vpop.f32.mrf.mxu1  ;;  %3217 = vmatpush3.msra.mxu0 %v4435_v9 }
 0x6ea   :  { %v1521_v20 = vadd.f32 %v1517_v19, %v422_v18  ;;  %3218 = vmatprep.subr.mxu0 %v3670_v0 }
 0x6eb   :  { %v3201_v21 = vpop.f32.mrf.mxu1  ;;  %3219 = vmatpush3.msra.mxu0 %v4440_v32 }
 0x6ec   :  { %3507 = vtanh.f32 %v1521_v20  ;;  %3220 = vmatprep.subr.mxu0 %v3670_v0 }
 0x6ed   :  { %3221 = vmatpush3.msra.mxu0 %v4445_v36 }
 0x6ee   :  { %3222 = vmatprep.subr.mxu0 %v3670_v0 }
 0x6ef   :  { %3223 = vmatpush3.msra.mxu0 %v4450_v43 }
 0x6f0   :  { %3224 = vmatprep.subr.mxu0 %v3670_v0 }
 0x6f1   :  { %3225 = vmatpush3.msra.mxu0 %v4455_v46 }
 0x6f2   :  { %3226 = vmatprep.subr.mxu0 %v3670_v0 }
 0x6f3   :  { %3227 = vmatpush3.msra.mxu0 %v4460_v48 }
 0x6f4   :  { %3228 = vmatprep.subr.mxu0 %v3670_v0 }
 0x6f5   :  { %3229 = vmatpush3.msra.mxu0 %v4465_v51 }
 0x6f6   :  { %3230 = vmatprep.subr.mxu0 %v3670_v0 }
 0x6f7   :  { %3231 = vmatpush3.msra.mxu0 %v4470_v57 }
 0x6f8   :  { %3232 = vmatprep.subr.mxu0 %v3670_v0 }
 0x6f9   :  { %v3508_v58 = vpop.eup %3507  ;;  %3233 = vmatpush3.msra.mxu0 %v4475_v1 }
 0x6fa   :  { %3235 = vmatmul.mubr.f32.vlgmr.msra.gmra.mxu0 %v3508_v58  ;;  %3272 = vmatprep.subr.mxu0 %v3670_v0 }
 0x6fb   :  { %3273 = vmatpush3.msra.mxu0 %v4398_v42  ;;  %3304 = vmatprep.mubr.msk.f32.mxu0 %vm3671_vm0, %v3670_v0 }
 0x6fc   :  { %3274 = vmatprep.subr.mxu0 %v3670_v0 }
 0x6fd   :  { %3275 = vmatpush3.msra.mxu0 %v4400_v61 }
 0x6fe   :  { %3276 = vmatprep.subr.mxu0 %v3670_v0 }
 0x6ff   :  { %3277 = vmatpush3.msra.mxu0 %v4406_v44 }
 0x700   :  { %3278 = vmatprep.subr.mxu0 %v3670_v0 }
 0x701   :  { %3279 = vmatpush3.msra.mxu0 %v4412_v56 }
 0x702   :  { %3280 = vmatprep.subr.mxu0 %v3670_v0 }
 0x703   :  { %3281 = vmatpush3.msra.mxu0 %v4418_v62 }
 0x704   :  { %3282 = vmatprep.subr.mxu0 %v3670_v0 }
 0x705   :  { %3283 = vmatpush3.msra.mxu0 %v4424_v63 }
 0x706   :  { %3284 = vmatprep.subr.mxu0 %v3670_v0 }
 0x707   :  { %3285 = vmatpush3.msra.mxu0 %v4430_v4 }
 0x708   :  { %3286 = vmatprep.subr.mxu0 %v3670_v0 }
 0x709   :  { %3287 = vmatpush3.msra.mxu0 %v4435_v9 }
 0x70a   :  { %3288 = vmatprep.subr.mxu0 %v3670_v0 }
 0x70b   :  { %3289 = vmatpush3.msra.mxu0 %v4440_v32 }
 0x70c   :  { %3290 = vmatprep.subr.mxu0 %v3670_v0 }
 0x70d   :  { %3291 = vmatpush3.msra.mxu0 %v4445_v36 }
 0x70e   :  { %3292 = vmatprep.subr.mxu0 %v3670_v0 }
 0x70f   :  { %3293 = vmatpush3.msra.mxu0 %v4450_v43 }
 0x710   :  { %3294 = vmatprep.subr.mxu0 %v3670_v0 }
 0x711   :  { %3295 = vmatpush3.msra.mxu0 %v4455_v46 }
 0x712   :  { %3296 = vmatprep.subr.mxu0 %v3670_v0 }
 0x713   :  { %3297 = vmatpush3.msra.mxu0 %v4460_v48 }
 0x714   :  { %3298 = vmatprep.subr.mxu0 %v3670_v0 }
 0x715   :  { %3299 = vmatpush3.msra.mxu0 %v4465_v51 }
 0x716   :  { %3300 = vmatprep.subr.mxu0 %v3670_v0 }
 0x717   :  { %3301 = vmatpush3.msra.mxu0 %v4470_v57 }
 0x718   :  { %3302 = vmatprep.subr.mxu0 %v3670_v0 }
 0x719   :  { %3303 = vmatpush3.msra.mxu0 %v4475_v1 }
 0x71a   :  { %3342 = vmatprep.subr.mxu0 %v3670_v0 }
 0x79a   :  { %v4602_v22 = vpop.f32.mrf.mxu0 }
 0x79b   :  { %v1430_v8 = vadd.f32 %v4542_v55, %v4602_v22 }
 0x79c   :  { %v3166_v23 = vpop.f32.mrf.mxu0 }
 0x7ba   :  { %v1590_v25 = vpop.f32.mrf.mxu0 }
 0x7bb   :  { %v1594_v26 = vadd.f32 %v1590_v25, %v566_v24 }
 0x7bc   :  { %v3236_v27 = vpop.f32.mrf.mxu0 }
 0x7bd   :  { %3509 = vtanh.f32 %v1594_v26 }
 0x7ca   :  { %v3510_v28 = vpop.eup %3509 }
 0x7cb   :  { %3270 = vmatmul.mubr.f32.vlgmr.msra.gmra.mxu1 %v3510_v28 }
 0x7cc   :  { %3308 = vmatpush3.msra.mxu1 %v4398_v42  ;;  %3339 = vmatprep.mubr.msk.f32.mxu1 %vm3671_vm0, %v3670_v0 }
 0x7cd   :  { %3309 = vmatprep.subr.mxu1 %v3670_v0 }
 0x7ce   :  { %3310 = vmatpush3.msra.mxu1 %v4400_v61 }
 0x7cf   :  { %3311 = vmatprep.subr.mxu1 %v3670_v0 }
 0x7d0   :  { %3312 = vmatpush3.msra.mxu1 %v4406_v44 }
 0x7d1   :  { %3313 = vmatprep.subr.mxu1 %v3670_v0 }
 0x7d2   :  { %3314 = vmatpush3.msra.mxu1 %v4412_v56 }
 0x7d3   :  { %3315 = vmatprep.subr.mxu1 %v3670_v0 }
 0x7d4   :  { %3316 = vmatpush3.msra.mxu1 %v4418_v62 }
 0x7d5   :  { %3317 = vmatprep.subr.mxu1 %v3670_v0 }
 0x7d6   :  { %3318 = vmatpush3.msra.mxu1 %v4424_v63 }
 0x7d7   :  { %3319 = vmatprep.subr.mxu1 %v3670_v0 }
 0x7d8   :  { %3320 = vmatpush3.msra.mxu1 %v4430_v4 }
 0x7d9   :  { %3321 = vmatprep.subr.mxu1 %v3670_v0 }
 0x7da   :  { %3322 = vmatpush3.msra.mxu1 %v4435_v9 }
 0x7db   :  { %3323 = vmatprep.subr.mxu1 %v3670_v0 }
 0x7dc   :  { %3324 = vmatpush3.msra.mxu1 %v4440_v32 }
 0x7dd   :  { %3325 = vmatprep.subr.mxu1 %v3670_v0 }
 0x7de   :  { %3326 = vmatpush3.msra.mxu1 %v4445_v36 }
 0x7df   :  { %3327 = vmatprep.subr.mxu1 %v3670_v0 }
 0x7e0   :  { %3328 = vmatpush3.msra.mxu1 %v4450_v43 }
 0x7e1   :  { %3329 = vmatprep.subr.mxu1 %v3670_v0 }
 0x7e2   :  { %3330 = vmatpush3.msra.mxu1 %v4455_v46 }
 0x7e3   :  { %3331 = vmatprep.subr.mxu1 %v3670_v0 }
 0x7e4   :  { %3332 = vmatpush3.msra.mxu1 %v4460_v48 }
 0x7e5   :  { %3333 = vmatprep.subr.mxu1 %v3670_v0 }
 0x7e6   :  { %3334 = vmatpush3.msra.mxu1 %v4465_v51 }
 0x7e7   :  { %3335 = vmatprep.subr.mxu1 %v3670_v0 }
 0x7e8   :  { %3336 = vmatpush3.msra.mxu1 %v4470_v57 }
 0x7e9   :  { %3337 = vmatprep.subr.mxu1 %v3670_v0 }
 0x7ea   :  { %3338 = vmatpush3.msra.mxu1 %v4475_v1 }
 0x7eb   :  { %3377 = vmatprep.subr.mxu1 %v3670_v0 }
 0x88b   :  { %v1663_v29 = vpop.f32.mrf.mxu1 }
 0x88c   :  { %v1667_v31 = vadd.f32 %v1663_v29, %v710_v6 }
 0x88d   :  { %v3271_v33 = vpop.f32.mrf.mxu1 }
 0x88e   :  { %3511 = vtanh.f32 %v1667_v31 }
 0x89b   :  { %v3512_v35 = vpop.eup %3511 }
 0x89c   :  { %3305 = vmatmul.mubr.f32.vlgmr.msra.gmra.mxu0 %v3512_v35 }
 0x89d   :  { %3343 = vmatpush3.msra.mxu0 %v4398_v42  ;;  %3374 = vmatprep.mubr.msk.f32.mxu0 %vm3671_vm0, %v3670_v0 }
 0x89e   :  { %3344 = vmatprep.subr.mxu0 %v3670_v0 }
 0x89f   :  { %3345 = vmatpush3.msra.mxu0 %v4400_v61 }
 0x8a0   :  { %3346 = vmatprep.subr.mxu0 %v3670_v0 }
 0x8a1   :  { %3347 = vmatpush3.msra.mxu0 %v4406_v44 }
 0x8a2   :  { %3348 = vmatprep.subr.mxu0 %v3670_v0 }
 0x8a3   :  { %3349 = vmatpush3.msra.mxu0 %v4412_v56 }
 0x8a4   :  { %3350 = vmatprep.subr.mxu0 %v3670_v0 }
 0x8a5   :  { %3351 = vmatpush3.msra.mxu0 %v4418_v62 }
 0x8a6   :  { %3352 = vmatprep.subr.mxu0 %v3670_v0 }
 0x8a7   :  { %3353 = vmatpush3.msra.mxu0 %v4424_v63 }
 0x8a8   :  { %3354 = vmatprep.subr.mxu0 %v3670_v0 }
 0x8a9   :  { %3355 = vmatpush3.msra.mxu0 %v4430_v4 }
 0x8aa   :  { %3356 = vmatprep.subr.mxu0 %v3670_v0 }
 0x8ab   :  { %3357 = vmatpush3.msra.mxu0 %v4435_v9 }
 0x8ac   :  { %3358 = vmatprep.subr.mxu0 %v3670_v0 }
 0x8ad   :  { %3359 = vmatpush3.msra.mxu0 %v4440_v32 }
 0x8ae   :  { %3360 = vmatprep.subr.mxu0 %v3670_v0 }
 0x8af   :  { %3361 = vmatpush3.msra.mxu0 %v4445_v36 }
 0x8b0   :  { %3362 = vmatprep.subr.mxu0 %v3670_v0 }
 0x8b1   :  { %3363 = vmatpush3.msra.mxu0 %v4450_v43 }
 0x8b2   :  { %3364 = vmatprep.subr.mxu0 %v3670_v0 }
 0x8b3   :  { %3365 = vmatpush3.msra.mxu0 %v4455_v46 }
 0x8b4   :  { %3366 = vmatprep.subr.mxu0 %v3670_v0 }
 0x8b5   :  { %3367 = vmatpush3.msra.mxu0 %v4460_v48 }
 0x8b6   :  { %3368 = vmatprep.subr.mxu0 %v3670_v0 }
 0x8b7   :  { %3369 = vmatpush3.msra.mxu0 %v4465_v51 }
 0x8b8   :  { %3370 = vmatprep.subr.mxu0 %v3670_v0 }
 0x8b9   :  { %3371 = vmatpush3.msra.mxu0 %v4470_v57 }
 0x8ba   :  { %3372 = vmatprep.subr.mxu0 %v3670_v0 }
 0x8bb   :  { %3373 = vmatpush3.msra.mxu0 %v4475_v1 }
 0x8bc   :  { %3412 = vmatprep.subr.mxu0 %v3670_v0 }
 0x95c   :  { %v1736_v39 = vpop.f32.mrf.mxu0 }
 0x95d   :  { %v1740_v41 = vadd.f32 %v1736_v39, %v854_v38 }
 0x95e   :  { %v3306_v53 = vpop.f32.mrf.mxu0 }
 0x95f   :  { %3513 = vtanh.f32 %v1740_v41 }
 0x96c   :  { %v3514_v54 = vpop.eup %3513 }
 0x96d   :  { %3340 = vmatmul.mubr.f32.vlgmr.msra.gmra.mxu1 %v3514_v54 }
 0x96e   :  { %3378 = vmatpush3.msra.mxu1 %v4398_v42  ;;  %3409 = vmatprep.mubr.msk.f32.mxu1 %vm3671_vm0, %v3670_v0 }
 0x96f   :  { %3379 = vmatprep.subr.mxu1 %v3670_v0 }
 0x970   :  { %3380 = vmatpush3.msra.mxu1 %v4400_v61 }
 0x971   :  { %3381 = vmatprep.subr.mxu1 %v3670_v0 }
 0x972   :  { %3382 = vmatpush3.msra.mxu1 %v4406_v44 }
 0x973   :  { %3383 = vmatprep.subr.mxu1 %v3670_v0 }
 0x974   :  { %3384 = vmatpush3.msra.mxu1 %v4412_v56 }
 0x975   :  { %3385 = vmatprep.subr.mxu1 %v3670_v0 }
 0x976   :  { %3386 = vmatpush3.msra.mxu1 %v4418_v62 }
 0x977   :  { %3387 = vmatprep.subr.mxu1 %v3670_v0 }
 0x978   :  { %3388 = vmatpush3.msra.mxu1 %v4424_v63 }
 0x979   :  { %3389 = vmatprep.subr.mxu1 %v3670_v0 }
 0x97a   :  { %3390 = vmatpush3.msra.mxu1 %v4430_v4 }
 0x97b   :  { %3391 = vmatprep.subr.mxu1 %v3670_v0 }
 0x97c   :  { %3392 = vmatpush3.msra.mxu1 %v4435_v9 }
 0x97d   :  { %3393 = vmatprep.subr.mxu1 %v3670_v0 }
 0x97e   :  { %3394 = vmatpush3.msra.mxu1 %v4440_v32 }
 0x97f   :  { %3395 = vmatprep.subr.mxu1 %v3670_v0 }
 0x980   :  { %3396 = vmatpush3.msra.mxu1 %v4445_v36 }
 0x981   :  { %3397 = vmatprep.subr.mxu1 %v3670_v0 }
 0x982   :  { %3398 = vmatpush3.msra.mxu1 %v4450_v43 }
 0x983   :  { %3399 = vmatprep.subr.mxu1 %v3670_v0 }
 0x984   :  { %3400 = vmatpush3.msra.mxu1 %v4455_v46 }
 0x985   :  { %3401 = vmatprep.subr.mxu1 %v3670_v0 }
 0x986   :  { %3402 = vmatpush3.msra.mxu1 %v4460_v48 }
 0x987   :  { %3403 = vmatprep.subr.mxu1 %v3670_v0 }
 0x988   :  { %3404 = vmatpush3.msra.mxu1 %v4465_v51 }
 0x989   :  { %3405 = vmatprep.subr.mxu1 %v3670_v0 }
 0x98a   :  { %3406 = vmatpush3.msra.mxu1 %v4470_v57 }
 0x98b   :  { %3407 = vmatprep.subr.mxu1 %v3670_v0 }
 0x98c   :  { %3408 = vmatpush3.msra.mxu1 %v4475_v1 }
 0x98d   :  { %3447 = vmatprep.subr.mxu1 %v3670_v0 }
 0xa2d   :  { %v1809_v60 = vpop.f32.mrf.mxu1 }
 0xa2e   :  { %v1813_v7 = vadd.f32 %v1809_v60, %v998_v49 }
 0xa2f   :  { %v3341_v30 = vpop.f32.mrf.mxu1 }
 0xa30   :  { %3515 = vtanh.f32 %v1813_v7 }
 0xa3d   :  { %v3516_v34 = vpop.eup %3515 }
 0xa3e   :  { %3375 = vmatmul.mubr.f32.vlgmr.msra.gmra.mxu0 %v3516_v34 }
 0xa3f   :  { %3413 = vmatpush3.msra.mxu0 %v4398_v42  ;;  %3444 = vmatprep.mubr.msk.f32.mxu0 %vm3671_vm0, %v3670_v0 }
 0xa40   :  { %3414 = vmatprep.subr.mxu0 %v3670_v0 }
 0xa41   :  { %3415 = vmatpush3.msra.mxu0 %v4400_v61 }
 0xa42   :  { %3416 = vmatprep.subr.mxu0 %v3670_v0 }
 0xa43   :  { %3417 = vmatpush3.msra.mxu0 %v4406_v44 }
 0xa44   :  { %3418 = vmatprep.subr.mxu0 %v3670_v0 }
 0xa45   :  { %3419 = vmatpush3.msra.mxu0 %v4412_v56 }
 0xa46   :  { %3420 = vmatprep.subr.mxu0 %v3670_v0 }
 0xa47   :  { %3421 = vmatpush3.msra.mxu0 %v4418_v62  ;;  %v2049_v62 = vld [vmem:[#allocation9 + $0x78] sm:$0xff] }
 0xa48   :  { %3422 = vmatprep.subr.mxu0 %v3670_v0 }
 0xa49   :  { %3423 = vmatpush3.msra.mxu0 %v4424_v63  ;;  %v2048_v63 = vld [vmem:[#allocation9 + $0x70] sm:$0xff] }
 0xa4a   :  { %3424 = vmatprep.subr.mxu0 %v3670_v0 }
 0xa4b   :  { %3425 = vmatpush3.msra.mxu0 %v4430_v4  ;;  %v2047_v4 = vld [vmem:[#allocation9 + $0x68] sm:$0xff] }
 0xa4c   :  { %3426 = vmatprep.subr.mxu0 %v3670_v0 }
 0xa4d   :  { %3427 = vmatpush3.msra.mxu0 %v4435_v9  ;;  %v2046_v9 = vld [vmem:[#allocation9 + $0x60] sm:$0xff] }
 0xa4e   :  { %3428 = vmatprep.subr.mxu0 %v3670_v0 }
 0xa4f   :  { %3429 = vmatpush3.msra.mxu0 %v4440_v32  ;;  %v2044_v32 = vld [vmem:[#allocation9 + $0x50] sm:$0xff] }
 0xa50   :  { %3430 = vmatprep.subr.mxu0 %v3670_v0 }
 0xa51   :  { %3431 = vmatpush3.msra.mxu0 %v4445_v36  ;;  %v2043_v36 = vld [vmem:[#allocation9 + $0x48] sm:$0xff] }
 0xa52   :  { %3432 = vmatprep.subr.mxu0 %v3670_v0 }
 0xa53   :  { %3433 = vmatpush3.msra.mxu0 %v4450_v43 }
 0xa54   :  { %3434 = vmatprep.subr.mxu0 %v3670_v0 }
 0xa55   :  { %3435 = vmatpush3.msra.mxu0 %v4455_v46 }
 0xa56   :  { %3436 = vmatprep.subr.mxu0 %v3670_v0 }
 0xa57   :  { %3437 = vmatpush3.msra.mxu0 %v4460_v48  ;;  %v2042_v48 = vld [vmem:[#allocation9 + $0x40] sm:$0xff] }
 0xa58   :  { %3438 = vmatprep.subr.mxu0 %v3670_v0 }
 0xa59   :  { %3439 = vmatpush3.msra.mxu0 %v4465_v51  ;;  %v2040_v51 = vld [vmem:[#allocation9 + $0x30] sm:$0xff] }
 0xa5a   :  { %3440 = vmatprep.subr.mxu0 %v3670_v0 }
 0xa5b   :  { %3441 = vmatpush3.msra.mxu0 %v4470_v57  ;;  %v2038_v57 = vld [vmem:[#allocation9 + $0x20] sm:$0xff] }
 0xa5c   :  { %3442 = vmatprep.subr.mxu0 %v3670_v0 }
 0xa5d   :  { %3443 = vmatpush3.msra.mxu0 %v4475_v1  ;;  %v2036_v1 = vld [vmem:[#allocation9 + $0x10] sm:$0xff] }
 0xafe   :  { %v1882_v42 = vpop.f32.mrf.mxu0 }
 0xaff   :  { %v1886_v61 = vadd.f32 %v1882_v42, %v1142_v2 }
 0xb00   :  { %v3376_v44 = vpop.f32.mrf.mxu0 }
 0xb01   :  { %3517 = vtanh.f32 %v1886_v61 }
 0xb0e   :  { %v3518_v56 = vpop.eup %3517 }
 0xb0f   :  { %3410 = vmatmul.mubr.f32.vlgmr.msra.gmra.mxu1 %v3518_v56 }
 0xb10   :  { %3479 = vmatprep.mubr.msk.f32.mxu1 %vm3671_vm0, %v3670_v0  ;;  %3448 = vmatpush3.msra.mxu1 %v2049_v62 }
 0xb11   :  { %3449 = vmatprep.subr.mxu1 %v3670_v0 }
 0xb12   :  { %3450 = vmatpush3.msra.mxu1 %v2048_v63 }
 0xb13   :  { %3451 = vmatprep.subr.mxu1 %v3670_v0 }
 0xb14   :  { %3452 = vmatpush3.msra.mxu1 %v2047_v4 }
 0xb15   :  { %3453 = vmatprep.subr.mxu1 %v3670_v0 }
 0xb16   :  { %3454 = vmatpush3.msra.mxu1 %v2046_v9 }
 0xb17   :  { %3455 = vmatprep.subr.mxu1 %v3670_v0 }
 0xb18   :  { %3456 = vmatpush3.msra.mxu1 %v2045_v37 }
 0xb19   :  { %3457 = vmatprep.subr.mxu1 %v3670_v0 }
 0xb1a   :  { %3458 = vmatpush3.msra.mxu1 %v2044_v32 }
 0xb1b   :  { %3459 = vmatprep.subr.mxu1 %v3670_v0 }
 0xb1c   :  { %3460 = vmatpush3.msra.mxu1 %v2043_v36 }
 0xb1d   :  { %3461 = vmatprep.subr.mxu1 %v3670_v0 }
 0xb1e   :  { %3462 = vmatpush3.msra.mxu1 %v2042_v48 }
 0xb1f   :  { %3463 = vmatprep.subr.mxu1 %v3670_v0 }
 0xb20   :  { %3464 = vmatpush3.msra.mxu1 %v2041_v50 }
 0xb21   :  { %3465 = vmatprep.subr.mxu1 %v3670_v0 }
 0xb22   :  { %3466 = vmatpush3.msra.mxu1 %v2040_v51 }
 0xb23   :  { %3467 = vmatprep.subr.mxu1 %v3670_v0 }
 0xb24   :  { %3468 = vmatpush3.msra.mxu1 %v2039_v52 }
 0xb25   :  { %3469 = vmatprep.subr.mxu1 %v3670_v0 }
 0xb26   :  { %3470 = vmatpush3.msra.mxu1 %v2038_v57 }
 0xb27   :  { %3471 = vmatprep.subr.mxu1 %v3670_v0 }
 0xb28   :  { %3472 = vmatpush3.msra.mxu1 %v2037_v59 }
 0xb29   :  { %3473 = vmatprep.subr.mxu1 %v3670_v0 }
 0xb2a   :  { %3474 = vmatpush3.msra.mxu1 %v2036_v1 }
 0xb2b   :  { %3475 = vmatprep.subr.mxu1 %v3670_v0 }
 0xb2c   :  { %3476 = vmatpush3.msra.mxu1 %v2035_v3 }
 0xb2d   :  { %3477 = vmatprep.subr.mxu1 %v3670_v0 }
 0xb2e   :  { %3478 = vmatpush3.msra.mxu1 %v2034_v5 }
 0xbcf   :  { %v1955_v43 = vpop.f32.mrf.mxu1 }
 0xbd0   :  { %v1959_v45 = vadd.f32 %v1955_v43, %v1286_v40 }
 0xbd1   :  { %v3411_v46 = vpop.f32.mrf.mxu1 }
 0xbd2   :  { %3519 = vtanh.f32 %v1959_v45 }
 0xbdf   :  { %v3520_v47 = vpop.eup %3519 }
 0xbe0   :  { %3445 = vmatmul.mubr.f32.vlgmr.msra.gmra.mxu0 %v3520_v47 }
 0xca0   :  { %v2028_v10 = vpop.f32.mrf.mxu0 }
 0xca1   :  { %v2032_v11 = vadd.f32 %v2028_v10, %v1430_v8 }
 0xca2   :  { %v3446_v12 = vpop.f32.mrf.mxu0 }
 0xca3   :  { %3521 = vtanh.f32 %v2032_v11 }
 0xcb0   :  { %v3522_v13 = vpop.eup %3521 }
 0xcb1   :  { %3480 = vmatmul.mubr.f32.vlgmr.msra.gmra.mxu1 %v3522_v13 }
 0xd71   :  { %v2123_v15 = vpop.f32.mrf.mxu1 }
 0xd72   :  { %v2124_v16 = vadd.f32 %v2155_v14, %v2123_v15 }
 0xd73   :  { %v3481_v0 = vpop.f32.mrf.mxu1 }
 0xd74   :  { %2127 = vst [vmem:[#allocation11] sm:$0xff] %v2124_v16 }
 0xd75   :  { %3647 = shalt.err (!%p3644_p10)
}
 0xd76   :  { %2137 = dma.vmem_to_hbm [thread:$0]  %s2135_s5, 128, %s4785_s9, [#allocation5]  }
 0xd77   :  { %3662 = dma.done.wait [#allocation5], 128  }
 0xd78   :  { %3663 = vsyncadd [#allocation5], 4294967168 }
 0xd79   :  { %2141 = vsyncpa [#allocation4], 1 }
 0xd7a   :  { %2142 = vsyncpa [#allocation7], 1 }
 0xd7b   :  { %2143 = vsyncpa [#allocation10], 1 }
 0xd7c   :  { %2144 = vsyncpa [#allocation5], 1 }

</bundles_post_ra>
